<compile_context>
chip_gen: v7x
topology: tpu7x:2x2x1
jax: 0.10.0
libtpu: 0.0.40
codegen_flags: <defaults>
</compile_context>

<pallas_src>
import functools

import jax
import jax.numpy as jnp
from jax import lax
from jax.experimental import pallas as pl
from jax.experimental.pallas import tpu as pltpu


# ------------------------------ dtype / tiling --------------------------------

def _chip_has_bf16_vpu():
    try:
        kind = jax.devices()[0].device_kind.lower()
    except Exception:
        return False
    return any(tag in kind for tag in ("v6", "v7", "7x"))


def _compute_dtype_for(x_dtype):
    x_dtype = jnp.dtype(x_dtype)
    if not jnp.issubdtype(x_dtype, jnp.floating):
        return x_dtype                      # integer max is exact in native dtype
    if x_dtype.itemsize >= 4:
        return x_dtype
    if x_dtype == jnp.bfloat16 and _chip_has_bf16_vpu():
        return x_dtype                      # v6e/v7x: native bf16 max (exact)
    return jnp.float32                      # v5e and older: no bf16 VPU path


_DEFAULT_PIPELINE_BUDGET = 12 << 20         # fits v5e's 16 MiB scoped-VMEM default


def _pick_channel_tile(N, C, H, W, io_itemsize, cdt_itemsize,
                       budget=_DEFAULT_PIPELINE_BUDGET):
    """Channel tile dividing C; budgets the full pipelined VMEM footprint."""

    def footprint(tc):
        blk = H * W * tc
        pipeline = 2 * (1 + 3) * blk * io_itemsize   # 1 in + 3 outs, double-buffered
        compute = 6 * blk * cdt_itemsize             # temporaries + hoisted masks
        return pipeline + compute

    tc = C
    # Shrink while the footprint exceeds budget, keeping the lane axis a multiple
    # of 128 (lane-dense stores are the biggest single measured lever).
    while tc % 256 == 0 and footprint(tc) > budget:
        tc //= 2
    # v7x megacore: ensure >=2 grid steps when N == 1 so both TensorCores work.
    while N * (C // tc) < 2 and tc % 256 == 0:
        tc //= 2

    vlim = None
    if footprint(tc) > budget:
        # Minimum lane-dense tile is still large: ask Mosaic for more scoped VMEM
        # rather than going lane-sparse.
        vlim = int(min(footprint(tc) * 5 // 4, 64 << 20))
    return tc, vlim


# --------------------- roll-path calibration (cached, safe) -------------------

_ROLL_W_OK = {}


def _roll_w_shift_ok(H, W, tc, cdt, vlim=None):
    """True iff the pltpu.roll-based W-axis (sublane) shift lowers on this backend
    and matches the intended (jnp.roll-like) semantics for this exact block
    config.  Any failure -> slice+concat fallback (always correct)."""
    cdt = jnp.dtype(cdt)
    key = (H, W, tc, cdt.name)
    if key in _ROLL_W_OK:
        return _ROLL_W_OK[key]
    ok = False
    try:
        x = (jnp.arange(H * W * tc, dtype=jnp.int32).reshape(H, W, tc) % 97).astype(cdt)
        if jnp.issubdtype(cdt, jnp.floating):
            neg = jnp.asarray(-jnp.inf, cdt)
        else:
            neg = jnp.asarray(jnp.iinfo(cdt).min, cdt)

        def probe(x_ref, o_ref):
            v = x_ref[...]
            iota_w = lax.broadcasted_iota(jnp.int32, v.shape, 1)
            m = v
            for d in (1, 2, -1, -2):
                valid = (iota_w >= d) if d > 0 else (iota_w < W + d)
                m = jnp.maximum(m, jnp.where(valid, pltpu.roll(v, d % W, 1), neg))
            o_ref[...] = m

        got = pl.pallas_call(
            probe,
            out_shape=jax.ShapeDtypeStruct((H, W, tc), cdt),
            compiler_params=pltpu.CompilerParams(vmem_limit_bytes=vlim),
        )(x)
        ref = lax.reduce_window(x, neg, lax.max, (1, 5, 1), (1, 1, 1),
                                ((0, 0), (2, 2), (0, 0)))
        ok = bool(jnp.array_equal(jax.block_until_ready(got), ref))
    except Exception:
        ok = False
    _ROLL_W_OK[key] = ok
    return ok


# --------------------------------- the kernel ---------------------------------

def _spp_cascade_kernel(x_ref, o5_ref, o9_ref, o13_ref, *, compute_dtype, use_roll):
    """(H, W, Ct) channels-last block -> pool5/pool9/pool13 via a cascaded 5x5
    stride-1 'same' max pool (SPPF identity: pool5^2 == pool9, pool5^3 == pool13)."""
    x = x_ref[...]
    out_dtype = o5_ref.dtype
    cdt = jnp.dtype(compute_dtype)
    if jnp.issubdtype(cdt, jnp.floating):
        neg = jnp.asarray(-jnp.inf, cdt)
    else:
        neg = jnp.asarray(jnp.iinfo(cdt).min, cdt)

    p = x.astype(cdt)
    H, W, _ = p.shape

    # ----- hoisted boundary helpers: built once, reused by all three pools -----
    h_fill = {a: jnp.full((a,) + p.shape[1:], neg, cdt) for a in (1, 2)}
    if use_roll:
        iota_w = lax.broadcasted_iota(jnp.int32, p.shape, 1)
        w_valid = {d: (iota_w >= d) if d > 0 else (iota_w < W + d)
                   for d in (1, 2, -1, -2)}
    else:
        w_fill = {a: jnp.full((p.shape[0], a, p.shape[2]), neg, cdt) for a in (1, 2)}

    def shift_h(v, d):
        # Leading axis: pure (W, Ct)-slab re-indexing, no lane/sublane movement.
        if abs(d) >= H:
            return jnp.full(v.shape, neg, cdt)
        if d > 0:
            return jnp.concatenate([h_fill[d], v[:H - d]], axis=0)
        return jnp.concatenate([v[-d:], h_fill[-d]], axis=0)

    def shift_w(v, d):
        if use_roll:
            # XLU sublane roll (free slot here) + hoisted VPU boundary select.
            return jnp.where(w_valid[d], pltpu.roll(v, d % W, 1), neg)
        if abs(d) >= W:
            return jnp.full(v.shape, neg, cdt)
        if d > 0:
            return jnp.concatenate([w_fill[d], v[:, :W - d, :]], axis=1)
        return jnp.concatenate([v[:, -d:, :], w_fill[-d]], axis=1)

    def window_max(v, shift_fn):
        m = v
        for d in (1, 2, -1, -2):
            m = jnp.maximum(m, shift_fn(v, d))
        return m

    def pool5(v):                           # separable 5x5, -inf 'same' padding
        return window_max(window_max(v, shift_w), shift_h)

    p = pool5(p)
    o5_ref[...] = p.astype(out_dtype)       # 5x5
    p = pool5(p)
    o9_ref[...] = p.astype(out_dtype)       # == 9x9
    p = pool5(p)
    o13_ref[...] = p.astype(out_dtype)      # == 13x13


# --------------------------------- wrappers ------------------------------------

def spp_pools_nhwc(x_nhwc):
    """Fused (pool5, pool9, pool13), stride 1, 'same' -inf padding; NHWC in/out."""
    N, H, W, C = x_nhwc.shape
    cdt = _compute_dtype_for(x_nhwc.dtype)
    tc, vlim = _pick_channel_tile(N, C, H, W, x_nhwc.dtype.itemsize,
                                  jnp.dtype(cdt).itemsize)
    use_roll = _roll_w_shift_ok(H, W, tc, cdt, vlim)

    spec = pl.BlockSpec((None, H, W, tc), lambda n, c: (n, 0, 0, c))
    out_sds = jax.ShapeDtypeStruct((N, H, W, C), x_nhwc.dtype)
    kernel = functools.partial(_spp_cascade_kernel,
                               compute_dtype=cdt, use_roll=use_roll)
    return pl.pallas_call(
        kernel,
        out_shape=(out_sds, out_sds, out_sds),
        grid=(N, C // tc),
        in_specs=[spec],
        out_specs=(spec, spec, spec),
        compiler_params=pltpu.CompilerParams(
            dimension_semantics=("parallel", "parallel"),
            vmem_limit_bytes=vlim),
    )(x_nhwc)


def spp_pools(x_nchw):
    """max_pool2d(x, k, stride=1, padding=k//2) for k in (5, 9, 13); NCHW in/out.

    The NCHW<->NHWC transposes are layout plumbing for the lane-dense kernel;
    channels-last pipelines should call spp_pools_nhwc directly and they vanish.
    """
    x_nhwc = jnp.transpose(x_nchw, (0, 2, 3, 1))
    p5, p9, p13 = spp_pools_nhwc(x_nhwc)
    back = lambda t: jnp.transpose(t, (0, 3, 1, 2))
    return back(p5), back(p9), back(p13)


def spp_forward(x, pool_sizes=(5, 9, 13)):
    """Bit-exact reproduction of the reference SPP.forward.

    Reference bug: `outputs` on its own line is a no-op, so the pooled tensors are
    never appended and the result equals x.  The dead pooling work is not launched
    here (under jit it would be DCE'd anyway)."""
    del pool_sizes
    outputs = [x]
    return jnp.concatenate(outputs, axis=1)


def spp_forward_intended(x):
    """Conventional SPP (what the module clearly intended): cat([x, p5, p9, p13])."""
    p5, p9, p13 = spp_pools(x)
    return jnp.concatenate([x, p5, p9, p13], axis=1)


# -------------------------------- validation -----------------------------------

def _maxpool_reference(x, k):
    """Pure-JAX reference (lax.reduce_window) for F.max_pool2d(k, 1, k//2), NCHW."""
    p = k // 2
    if jnp.issubdtype(x.dtype, jnp.floating):
        init = jnp.asarray(-jnp.inf, x.dtype)
    else:
        init = jnp.asarray(jnp.iinfo(x.dtype).min, x.dtype)
    return lax.reduce_window(
        x, init, lax.max,
        window_dimensions=(1, 1, k, k),
        window_strides=(1, 1, 1, 1),
        padding=((0, 0), (0, 0), (p, p), (p, p)),
    )


if __name__ == "__main__":
    key = jax.random.PRNGKey(0)
    x = jax.random.normal(key, (2, 4, 16, 16), dtype=jnp.float32)   # N, C, H, W

    # Fused cascaded kernel vs. reduce_window reference for every pool size (f32).
    pools = jax.block_until_ready(spp_pools(x))
    for k, p in zip((5, 9, 13), pools):
        ref = _maxpool_reference(x, k)
        assert p.shape == x.shape, f"shape mismatch for k={k}"
        assert jnp.allclose(p, ref), f"max_pool2d mismatch for k={k}"

    # bf16 path (native compute on v6e/v7x, f32 upcast on v5e) -- max is exact.
    xb = x.astype(jnp.bfloat16)
    pools_b = jax.block_until_ready(spp_pools(xb))
    for k, pb in zip((5, 9, 13), pools_b):
        refb = _maxpool_reference(xb, k)
        assert pb.dtype == xb.dtype
        assert jnp.array_equal(pb, refb), f"bf16 max_pool2d mismatch for k={k}"

    # Intended (bug-fixed) SPP output: 4*C channels.
    intended = jax.block_until_ready(spp_forward_intended(x))
    ref_intended = jnp.concatenate(
        [x] + [_maxpool_reference(x, k) for k in (5, 9, 13)], axis=1)
    assert intended.shape == (2, 16, 16, 16)
    assert jnp.allclose(intended, ref_intended)

    # Faithful forward (matches the PyTorch module exactly: output == x).
    out = jax.block_until_ready(spp_forward(x))
    assert out.shape == x.shape
    assert jnp.array_equal(out, x)

    print("KERNEL_OK")
</pallas_src>

<mosaic_0001>
module attributes {stable_mosaic.version = 11 : i64} {
  func.func @_spp_cascade_kernel(%arg0: i32, %arg1: i32, %arg2: memref<1x16x16x4xf32, #tpu.memory_space<vmem>>, %arg3: memref<1x16x16x4xf32, #tpu.memory_space<vmem>>, %arg4: memref<1x16x16x4xf32, #tpu.memory_space<vmem>>, %arg5: memref<1x16x16x4xf32, #tpu.memory_space<vmem>>) attributes {dimension_semantics = [#tpu.dimension_semantics<parallel>, #tpu.dimension_semantics<parallel>], iteration_bounds = array<i64: 2, 1>, scalar_prefetch = 0 : i64, scratch_operands = 0 : i64, tpu.core_type = #tpu.core_type<tc>, window_params = [{transform_indices = @transform_0, window_bounds = array<i64: 1, 16, 16, 4>}, {transform_indices = @transform_1, window_bounds = array<i64: 1, 16, 16, 4>}, {transform_indices = @transform_2, window_bounds = array<i64: 1, 16, 16, 4>}, {transform_indices = @transform_3, window_bounds = array<i64: 1, 16, 16, 4>}]} {
    %c0 = arith.constant 0 : index
    %c0_0 = arith.constant 0 : index
    %c0_1 = arith.constant 0 : index
    %c0_2 = arith.constant 0 : index
    %0 = vector.load %arg2[%c0, %c0_0, %c0_1, %c0_2] : memref<1x16x16x4xf32, #tpu.memory_space<vmem>>, vector<1x16x16x4xf32>
    %1 = vector.shape_cast %0 : vector<1x16x16x4xf32> to vector<16x16x4xf32>
    %cst = arith.constant 0xFF800000 : f32
    %2 = vector.broadcast %cst : f32 to vector<1x16x4xf32>
    %cst_3 = arith.constant 0xFF800000 : f32
    %3 = vector.broadcast %cst_3 : f32 to vector<2x16x4xf32>
    %cst_4 = arith.constant 0xFF800000 : f32
    %4 = vector.broadcast %cst_4 : f32 to vector<16x1x4xf32>
    %cst_5 = arith.constant 0xFF800000 : f32
    %5 = vector.broadcast %cst_5 : f32 to vector<16x2x4xf32>
    %6 = vector.extract_strided_slice %1 {offsets = [0, 0, 0], sizes = [16, 15, 4], strides = [1, 1, 1]} : vector<16x16x4xf32> to vector<16x15x4xf32>
    %7 = tpu.concatenate %4, %6 in 1 : vector<16x1x4xf32>, vector<16x15x4xf32> -> vector<16x16x4xf32>
    %8 = arith.maximumf %1, %7 : vector<16x16x4xf32>
    %9 = vector.extract_strided_slice %1 {offsets = [0, 0, 0], sizes = [16, 14, 4], strides = [1, 1, 1]} : vector<16x16x4xf32> to vector<16x14x4xf32>
    %10 = tpu.concatenate %5, %9 in 1 : vector<16x2x4xf32>, vector<16x14x4xf32> -> vector<16x16x4xf32>
    %11 = arith.maximumf %8, %10 : vector<16x16x4xf32>
    %12 = vector.extract_strided_slice %1 {offsets = [0, 1, 0], sizes = [16, 15, 4], strides = [1, 1, 1]} : vector<16x16x4xf32> to vector<16x15x4xf32>
    %13 = tpu.concatenate %12, %4 in 1 : vector<16x15x4xf32>, vector<16x1x4xf32> -> vector<16x16x4xf32>
    %14 = arith.maximumf %11, %13 : vector<16x16x4xf32>
    %15 = vector.extract_strided_slice %1 {offsets = [0, 2, 0], sizes = [16, 14, 4], strides = [1, 1, 1]} : vector<16x16x4xf32> to vector<16x14x4xf32>
    %16 = tpu.concatenate %15, %5 in 1 : vector<16x14x4xf32>, vector<16x2x4xf32> -> vector<16x16x4xf32>
    %17 = arith.maximumf %14, %16 : vector<16x16x4xf32>
    %18 = vector.extract_strided_slice %17 {offsets = [0, 0, 0], sizes = [15, 16, 4], strides = [1, 1, 1]} : vector<16x16x4xf32> to vector<15x16x4xf32>
    %19 = tpu.concatenate %2, %18 in 0 : vector<1x16x4xf32>, vector<15x16x4xf32> -> vector<16x16x4xf32>
    %20 = arith.maximumf %17, %19 : vector<16x16x4xf32>
    %21 = vector.extract_strided_slice %17 {offsets = [0, 0, 0], sizes = [14, 16, 4], strides = [1, 1, 1]} : vector<16x16x4xf32> to vector<14x16x4xf32>
    %22 = tpu.concatenate %3, %21 in 0 : vector<2x16x4xf32>, vector<14x16x4xf32> -> vector<16x16x4xf32>
    %23 = arith.maximumf %20, %22 : vector<16x16x4xf32>
    %24 = vector.extract_strided_slice %17 {offsets = [1, 0, 0], sizes = [15, 16, 4], strides = [1, 1, 1]} : vector<16x16x4xf32> to vector<15x16x4xf32>
    %25 = tpu.concatenate %24, %2 in 0 : vector<15x16x4xf32>, vector<1x16x4xf32> -> vector<16x16x4xf32>
    %26 = arith.maximumf %23, %25 : vector<16x16x4xf32>
    %27 = vector.extract_strided_slice %17 {offsets = [2, 0, 0], sizes = [14, 16, 4], strides = [1, 1, 1]} : vector<16x16x4xf32> to vector<14x16x4xf32>
    %28 = tpu.concatenate %27, %3 in 0 : vector<14x16x4xf32>, vector<2x16x4xf32> -> vector<16x16x4xf32>
    %29 = arith.maximumf %26, %28 : vector<16x16x4xf32>
    %c0_6 = arith.constant 0 : index
    %c0_7 = arith.constant 0 : index
    %c0_8 = arith.constant 0 : index
    %c0_9 = arith.constant 0 : index
    %30 = vector.load %arg3[%c0_6, %c0_7, %c0_8, %c0_9] : memref<1x16x16x4xf32, #tpu.memory_space<vmem>>, vector<1x16x16x4xf32>
    %31 = vector.shape_cast %30 : vector<1x16x16x4xf32> to vector<16x16x4xf32>
    %32 = vector.shape_cast %29 : vector<16x16x4xf32> to vector<1x16x16x4xf32>
    tpu.vector_store %arg3[%c0_6, %c0_7, %c0_8, %c0_9], %32 {strides = array<i32>} : memref<1x16x16x4xf32, #tpu.memory_space<vmem>>, vector<1x16x16x4xf32>,
    %33 = vector.extract_strided_slice %29 {offsets = [0, 0, 0], sizes = [16, 15, 4], strides = [1, 1, 1]} : vector<16x16x4xf32> to vector<16x15x4xf32>
    %34 = tpu.concatenate %4, %33 in 1 : vector<16x1x4xf32>, vector<16x15x4xf32> -> vector<16x16x4xf32>
    %35 = arith.maximumf %29, %34 : vector<16x16x4xf32>
    %36 = vector.extract_strided_slice %29 {offsets = [0, 0, 0], sizes = [16, 14, 4], strides = [1, 1, 1]} : vector<16x16x4xf32> to vector<16x14x4xf32>
    %37 = tpu.concatenate %5, %36 in 1 : vector<16x2x4xf32>, vector<16x14x4xf32> -> vector<16x16x4xf32>
    %38 = arith.maximumf %35, %37 : vector<16x16x4xf32>
    %39 = vector.extract_strided_slice %29 {offsets = [0, 1, 0], sizes = [16, 15, 4], strides = [1, 1, 1]} : vector<16x16x4xf32> to vector<16x15x4xf32>
    %40 = tpu.concatenate %39, %4 in 1 : vector<16x15x4xf32>, vector<16x1x4xf32> -> vector<16x16x4xf32>
    %41 = arith.maximumf %38, %40 : vector<16x16x4xf32>
    %42 = vector.extract_strided_slice %29 {offsets = [0, 2, 0], sizes = [16, 14, 4], strides = [1, 1, 1]} : vector<16x16x4xf32> to vector<16x14x4xf32>
    %43 = tpu.concatenate %42, %5 in 1 : vector<16x14x4xf32>, vector<16x2x4xf32> -> vector<16x16x4xf32>
    %44 = arith.maximumf %41, %43 : vector<16x16x4xf32>
    %45 = vector.extract_strided_slice %44 {offsets = [0, 0, 0], sizes = [15, 16, 4], strides = [1, 1, 1]} : vector<16x16x4xf32> to vector<15x16x4xf32>
    %46 = tpu.concatenate %2, %45 in 0 : vector<1x16x4xf32>, vector<15x16x4xf32> -> vector<16x16x4xf32>
    %47 = arith.maximumf %44, %46 : vector<16x16x4xf32>
    %48 = vector.extract_strided_slice %44 {offsets = [0, 0, 0], sizes = [14, 16, 4], strides = [1, 1, 1]} : vector<16x16x4xf32> to vector<14x16x4xf32>
    %49 = tpu.concatenate %3, %48 in 0 : vector<2x16x4xf32>, vector<14x16x4xf32> -> vector<16x16x4xf32>
    %50 = arith.maximumf %47, %49 : vector<16x16x4xf32>
    %51 = vector.extract_strided_slice %44 {offsets = [1, 0, 0], sizes = [15, 16, 4], strides = [1, 1, 1]} : vector<16x16x4xf32> to vector<15x16x4xf32>
    %52 = tpu.concatenate %51, %2 in 0 : vector<15x16x4xf32>, vector<1x16x4xf32> -> vector<16x16x4xf32>
    %53 = arith.maximumf %50, %52 : vector<16x16x4xf32>
    %54 = vector.extract_strided_slice %44 {offsets = [2, 0, 0], sizes = [14, 16, 4], strides = [1, 1, 1]} : vector<16x16x4xf32> to vector<14x16x4xf32>
    %55 = tpu.concatenate %54, %3 in 0 : vector<14x16x4xf32>, vector<2x16x4xf32> -> vector<16x16x4xf32>
    %56 = arith.maximumf %53, %55 : vector<16x16x4xf32>
    %c0_10 = arith.constant 0 : index
    %c0_11 = arith.constant 0 : index
    %c0_12 = arith.constant 0 : index
    %c0_13 = arith.constant 0 : index
    %57 = vector.load %arg4[%c0_10, %c0_11, %c0_12, %c0_13] : memref<1x16x16x4xf32, #tpu.memory_space<vmem>>, vector<1x16x16x4xf32>
    %58 = vector.shape_cast %57 : vector<1x16x16x4xf32> to vector<16x16x4xf32>
    %59 = vector.shape_cast %56 : vector<16x16x4xf32> to vector<1x16x16x4xf32>
    tpu.vector_store %arg4[%c0_10, %c0_11, %c0_12, %c0_13], %59 {strides = array<i32>} : memref<1x16x16x4xf32, #tpu.memory_space<vmem>>, vector<1x16x16x4xf32>,
    %60 = vector.extract_strided_slice %56 {offsets = [0, 0, 0], sizes = [16, 15, 4], strides = [1, 1, 1]} : vector<16x16x4xf32> to vector<16x15x4xf32>
    %61 = tpu.concatenate %4, %60 in 1 : vector<16x1x4xf32>, vector<16x15x4xf32> -> vector<16x16x4xf32>
    %62 = arith.maximumf %56, %61 : vector<16x16x4xf32>
    %63 = vector.extract_strided_slice %56 {offsets = [0, 0, 0], sizes = [16, 14, 4], strides = [1, 1, 1]} : vector<16x16x4xf32> to vector<16x14x4xf32>
    %64 = tpu.concatenate %5, %63 in 1 : vector<16x2x4xf32>, vector<16x14x4xf32> -> vector<16x16x4xf32>
    %65 = arith.maximumf %62, %64 : vector<16x16x4xf32>
    %66 = vector.extract_strided_slice %56 {offsets = [0, 1, 0], sizes = [16, 15, 4], strides = [1, 1, 1]} : vector<16x16x4xf32> to vector<16x15x4xf32>
    %67 = tpu.concatenate %66, %4 in 1 : vector<16x15x4xf32>, vector<16x1x4xf32> -> vector<16x16x4xf32>
    %68 = arith.maximumf %65, %67 : vector<16x16x4xf32>
    %69 = vector.extract_strided_slice %56 {offsets = [0, 2, 0], sizes = [16, 14, 4], strides = [1, 1, 1]} : vector<16x16x4xf32> to vector<16x14x4xf32>
    %70 = tpu.concatenate %69, %5 in 1 : vector<16x14x4xf32>, vector<16x2x4xf32> -> vector<16x16x4xf32>
    %71 = arith.maximumf %68, %70 : vector<16x16x4xf32>
    %72 = vector.extract_strided_slice %71 {offsets = [0, 0, 0], sizes = [15, 16, 4], strides = [1, 1, 1]} : vector<16x16x4xf32> to vector<15x16x4xf32>
    %73 = tpu.concatenate %2, %72 in 0 : vector<1x16x4xf32>, vector<15x16x4xf32> -> vector<16x16x4xf32>
    %74 = arith.maximumf %71, %73 : vector<16x16x4xf32>
    %75 = vector.extract_strided_slice %71 {offsets = [0, 0, 0], sizes = [14, 16, 4], strides = [1, 1, 1]} : vector<16x16x4xf32> to vector<14x16x4xf32>
    %76 = tpu.concatenate %3, %75 in 0 : vector<2x16x4xf32>, vector<14x16x4xf32> -> vector<16x16x4xf32>
    %77 = arith.maximumf %74, %76 : vector<16x16x4xf32>
    %78 = vector.extract_strided_slice %71 {offsets = [1, 0, 0], sizes = [15, 16, 4], strides = [1, 1, 1]} : vector<16x16x4xf32> to vector<15x16x4xf32>
    %79 = tpu.concatenate %78, %2 in 0 : vector<15x16x4xf32>, vector<1x16x4xf32> -> vector<16x16x4xf32>
    %80 = arith.maximumf %77, %79 : vector<16x16x4xf32>
    %81 = vector.extract_strided_slice %71 {offsets = [2, 0, 0], sizes = [14, 16, 4], strides = [1, 1, 1]} : vector<16x16x4xf32> to vector<14x16x4xf32>
    %82 = tpu.concatenate %81, %3 in 0 : vector<14x16x4xf32>, vector<2x16x4xf32> -> vector<16x16x4xf32>
    %83 = arith.maximumf %80, %82 : vector<16x16x4xf32>
    %c0_14 = arith.constant 0 : index
    %c0_15 = arith.constant 0 : index
    %c0_16 = arith.constant 0 : index
    %c0_17 = arith.constant 0 : index
    %84 = vector.load %arg5[%c0_14, %c0_15, %c0_16, %c0_17] : memref<1x16x16x4xf32, #tpu.memory_space<vmem>>, vector<1x16x16x4xf32>
    %85 = vector.shape_cast %84 : vector<1x16x16x4xf32> to vector<16x16x4xf32>
    %86 = vector.shape_cast %83 : vector<16x16x4xf32> to vector<1x16x16x4xf32>
    tpu.vector_store %arg5[%c0_14, %c0_15, %c0_16, %c0_17], %86 {strides = array<i32>} : memref<1x16x16x4xf32, #tpu.memory_space<vmem>>, vector<1x16x16x4xf32>,
    return
  }
  func.func @transform_0(%arg0: i32, %arg1: i32) -> (i32, i32, i32, i32) {
    %c0_i32 = arith.constant 0 : i32
    %c0_i32_0 = arith.constant 0 : i32
    %c0_i32_1 = arith.constant 0 : i32
    return %arg0, %c0_i32, %c0_i32_0, %arg1 : i32, i32, i32, i32
  }
  func.func @transform_1(%arg0: i32, %arg1: i32) -> (i32, i32, i32, i32) {
    %c0_i32 = arith.constant 0 : i32
    %c0_i32_0 = arith.constant 0 : i32
    %c0_i32_1 = arith.constant 0 : i32
    return %arg0, %c0_i32, %c0_i32_0, %arg1 : i32, i32, i32, i32
  }
  func.func @transform_2(%arg0: i32, %arg1: i32) -> (i32, i32, i32, i32) {
    %c0_i32 = arith.constant 0 : i32
    %c0_i32_0 = arith.constant 0 : i32
    %c0_i32_1 = arith.constant 0 : i32
    return %arg0, %c0_i32, %c0_i32_0, %arg1 : i32, i32, i32, i32
  }
  func.func @transform_3(%arg0: i32, %arg1: i32) -> (i32, i32, i32, i32) {
    %c0_i32 = arith.constant 0 : i32
    %c0_i32_0 = arith.constant 0 : i32
    %c0_i32_1 = arith.constant 0 : i32
    return %arg0, %c0_i32, %c0_i32_0, %arg1 : i32, i32, i32, i32
  }
}

</mosaic_0001>

<bundles_post_ra>
// kernel: tpu_custom_call.1
= control target key start
LH: loop header
LB: loop body
LE: loop exit
PB: predicated region body
PF: predicated region fallthrough
CT: control target
= control target key end

     0   :  { %s2608_s12 = smov 0   ;;  %s2610_s13 = smov 0   ;;  %s4713_s0 = inlined_call_operand.vmem [shape: f32[2,16,16,4], index: 0, kind: input, shape index: {}]   ;;  %s4714_s1 = inlined_call_operand.vmem [shape: f32[2,16,16,4], index: 1, kind: output, shape index: {0}]   ;;  %s4715_s2 = inlined_call_operand.vmem [shape: f32[2,16,16,4], index: 2, kind: output, shape index: {1}]   ;;  %s4716_s3 = inlined_call_operand.vmem [shape: f32[2,16,16,4], index: 3, kind: output, shape index: {2}]  }
   0x1   :  { %s2612_s14 = smov 0  }
   0x2 LB: > { %s26_s15 = sadd.s32 1, %s2582_s13  ;;  %p2525_p0 = scmp.ge.s32.totalorder %s2586_s14, 1  ;;  %s2586_s14 = sphi %s2612_s14, %s14_s14   ;;  %s2582_s13 = sphi %s2610_s13, %s4878_s13   ;;  %s2578_s12 = sphi %s2608_s12, %s4877_s12  }
   0x3   : > { %p28_p1 = scmp.ge.s32.totalorder %s26_s15, 2  ;;  %p165_p2 = scmp.lt.s32.totalorder %s2586_s14, 3 }
   0x5   : > { %s4880_s15 = smov (%p28_p1, %s26_s15), 0  ;;  %p166_p3 = pnand %p2525_p0, %p165_p2 }
   0x7   : > { %169 = sbr.rel (%p166_p3) target bundleno = 406 (0x196), region = 24 }
   0xe   : > { %p211_p4 = scmp.lt.s32.totalorder %s2578_s12, 1  ;;  %vm307_vm0 = vcmask 1040384   ;;  %vm436_vm1 = vcmask 1041408   ;;  %vm565_vm2 = vcmask 1046528   ;;  %vm694_vm3 = vcmask 1045504  }
   0xf   : > { %vm935_vm4 = vcmask 31744  }
  0x10   : > { %s4882_s12 = smov (!%p211_p4, %s2578_s12), 1 }
  0x11   : > { %s2626_s16 = sshll.u32 %s4882_s12, 8 }
  0x12   : > { %s2632_s19 = scalar_lea.vmem %s4713_s0, %s2626_s16  ;;  %s2693_s22 = scalar_lea.vmem %s4714_s1, %s2626_s16 }
  0x13   : > { %v2635_v0 = vld [vmem:[%s2632_s19] sm:$0xff]  ;;  %v2638_v1 = vld [vmem:[%s2632_s19 + $0x10] sm:$0xff]  ;;  %v2647_v6 = vld [vmem:[%s2632_s19 + $0x8] sm:$0xff]  ;;  %s3480_s25 = scalar_lea.vmem %s4715_s2, %s2626_s16  ;;  %s4213_s28 = scalar_lea.vmem %s4716_s3, %s2626_s16 }
  0x14   : > { %v2641_v2 = vld [vmem:[%s2632_s19 + $0x20] sm:$0xff]  ;;  %v308_v3 = vrot.slane %v2635_v0, 7  ;;  %v311_v4 = vrot.slane %v2638_v1, 7  ;;  %v437_v5 = vrot.slane %v2635_v0, 6  ;;  %v440_v8 = vrot.slane %v2638_v1, 6  ;;  %v246_v19 = vld [vmem:[%s2632_s19 + $0x18] sm:$0xff] }
  0x15   : > { %v314_v7 = vrot.slane %v2641_v2, 7  ;;  %v443_v9 = vrot.slane %v2641_v2, 6  ;;  %v566_v10 = vrot.slane %v2635_v0, 1  ;;  %v567_v14 = vrot.slane %v2647_v6, 1  ;;  %v248_v24 = vld [vmem:[%s2632_s19 + $0x28] sm:$0xff] }
  0x16   : > { %v388_v11 = vsel %vm307_vm0, -inf, %v308_v3  ;;  %v389_v12 = vsel %vm307_vm0, -inf, %v311_v4  ;;  %v517_v13 = vsel %vm436_vm1, -inf, %v437_v5  ;;  %v518_v18 = vsel %vm436_vm1, -inf, %v440_v8 }
  0x17   : > { %v390_v15 = vsel %vm307_vm0, -inf, %v314_v7  ;;  %v404_v16 = vmax.f32 %v2635_v0, %v388_v11  ;;  %v406_v17 = vmax.f32 %v2638_v1, %v389_v12  ;;  %v519_v21 = vsel %vm436_vm1, -inf, %v443_v9 }
  0x18   : > { %v408_v20 = vmax.f32 %v2641_v2, %v390_v15  ;;  %v568_v22 = vsel %vm565_vm2, %v566_v10, %v567_v14  ;;  %v569_v23 = vrot.slane %v2638_v1, 1  ;;  %v570_v27 = vrot.slane %v246_v19, 1 }
  0x19   : > { %v533_v25 = vmax.f32 %v404_v16, %v517_v13  ;;  %v535_v26 = vmax.f32 %v406_v17, %v518_v18  ;;  %v572_v28 = vrot.slane %v2641_v2, 1  ;;  %v573_v30 = vrot.slane %v248_v24, 1  ;;  %v250_v13 = vld [vmem:[%s2632_s19 + $0x38] sm:$0xff] }
  0x1a   : > { %v537_v29 = vmax.f32 %v408_v20, %v519_v21  ;;  %v695_v31 = vrot.slane %v2635_v0, 2  ;;  %v696_v32 = vrot.slane %v2647_v6, 2  ;;  %v571_v33 = vsel %vm565_vm2, %v569_v23, %v570_v27  ;;  %v251_v23 = vld [vmem:[%s2632_s19 + $0x40] sm:$0xff] }
  0x1b   : > { %v662_v34 = vmax.f32 %v533_v25, %v568_v22  ;;  %v698_v35 = vrot.slane %v2638_v1, 2  ;;  %v699_v36 = vrot.slane %v246_v19, 2  ;;  %v574_v37 = vsel %vm565_vm2, %v572_v28, %v573_v30  ;;  %v249_v1 = vld [vmem:[%s2632_s19 + $0x30] sm:$0xff] }
  0x1c   : > { %v664_v38 = vmax.f32 %v535_v26, %v571_v33  ;;  %v697_v39 = vsel %vm694_vm3, %v695_v31, %v696_v32  ;;  %v701_v40 = vrot.slane %v2641_v2, 2  ;;  %v666_v41 = vmax.f32 %v537_v29, %v574_v37 }
  0x1d   : > { %v700_v42 = vsel %vm694_vm3, %v698_v35, %v699_v36  ;;  %v702_v43 = vrot.slane %v248_v24, 2  ;;  %v2676_v44 = vmax.f32 %v662_v34, %v697_v39  ;;  %v309_v46 = vrot.slane %v2647_v6, 7 }
  0x1e   : > { %v2678_v45 = vmax.f32 %v664_v38, %v700_v42  ;;  %v312_v47 = vrot.slane %v246_v19, 7  ;;  %v315_v48 = vrot.slane %v248_v24, 7  ;;  %v438_v50 = vrot.slane %v2647_v6, 6 }
  0x1f   : > { %v703_v49 = vsel %vm694_vm3, %v701_v40, %v702_v43  ;;  %v441_v51 = vrot.slane %v246_v19, 6  ;;  %v444_v52 = vrot.slane %v248_v24, 6  ;;  %v310_v55 = vsel %vm307_vm0, %v308_v3, %v309_v46 }
  0x20   : > { %v2683_v53 = vmax.f32 %v666_v41, %v703_v49  ;;  %v823_v54 = vmax.f32 %v2678_v45, %v2676_v44  ;;  %v313_v56 = vsel %vm307_vm0, %v311_v4, %v312_v47  ;;  %v316_v57 = vsel %vm307_vm0, %v314_v7, %v315_v48 }
  0x21   : > { %v405_v58 = vmax.f32 %v2647_v6, %v310_v55  ;;  %v407_v59 = vmax.f32 %v246_v19, %v313_v56  ;;  %v439_v60 = vsel %vm436_vm1, %v437_v5, %v438_v50  ;;  %v409_v62 = vmax.f32 %v248_v24, %v316_v57 }
  0x22   : > { %v2699_v61 = vmax.f32 %v823_v54, %v2683_v53  ;;  %v442_v63 = vsel %vm436_vm1, %v440_v8, %v441_v51  ;;  %v445_v0 = vsel %vm436_vm1, %v443_v9, %v444_v52  ;;  %v646_v4 = vsel %vm565_vm2, %v567_v14, -inf }
  0x23   : > { %v534_v2 = vmax.f32 %v405_v58, %v439_v60  ;;  %v536_v3 = vmax.f32 %v407_v59, %v442_v63  ;;  %v647_v7 = vsel %vm565_vm2, %v570_v27, -inf  ;;  %v538_v5 = vmax.f32 %v409_v62, %v445_v0 }
  0x24   : > { %936 = vst.msk [vmem:[%s2693_s22] sm:$0xff] %vm935_vm4, %v2699_v61  ;;  %v648_v6 = vsel %vm565_vm2, %v573_v30, -inf  ;;  %v775_v10 = vsel %vm694_vm3, %v696_v32, -inf  ;;  %v776_v8 = vsel %vm694_vm3, %v699_v36, -inf  ;;  %v777_v12 = vsel %vm694_vm3, %v702_v43, -inf  ;;  %v252_v43 = vld [vmem:[%s2632_s19 + $0x48] sm:$0xff] }
  0x25   : > { %v663_v11 = vmax.f32 %v534_v2, %v646_v4  ;;  %v665_v9 = vmax.f32 %v536_v3, %v647_v7  ;;  %v317_v15 = vrot.slane %v249_v1, 7  ;;  %v667_v14 = vmax.f32 %v538_v5, %v648_v6 }
  0x26   : > { %v446_v16 = vrot.slane %v249_v1, 6  ;;  %v575_v17 = vrot.slane %v249_v1, 1  ;;  %v576_v18 = vrot.slane %v250_v13, 1  ;;  %v704_v22 = vrot.slane %v249_v1, 2 }
  0x27   : > { %v2714_v19 = vmax.f32 %v663_v11, %v775_v10  ;;  %v2716_v20 = vmax.f32 %v665_v9, %v776_v8  ;;  %v391_v21 = vsel %vm307_vm0, -inf, %v317_v15  ;;  %v2720_v24 = vmax.f32 %v667_v14, %v777_v12  ;;  %v253_v12 = vld [vmem:[%s2632_s19 + $0x50] sm:$0xff] }
  0x28   : > { %v410_v25 = vmax.f32 %v249_v1, %v391_v21  ;;  %v520_v26 = vsel %vm436_vm1, -inf, %v446_v16  ;;  %v577_v27 = vsel %vm565_vm2, %v575_v17, %v576_v18  ;;  %v705_v29 = vrot.slane %v250_v13, 2 }
  0x29   : > { %v824_v28 = vmax.f32 %v2716_v20, %v2714_v19  ;;  %v318_v30 = vrot.slane %v250_v13, 7  ;;  %v447_v31 = vrot.slane %v250_v13, 6  ;;  %v649_v33 = vsel %vm565_vm2, %v576_v18, -inf }
  0x2a   : > { %v539_v32 = vmax.f32 %v410_v25, %v520_v26  ;;  %v320_v34 = vrot.slane %v251_v23, 7  ;;  %v449_v35 = vrot.slane %v251_v23, 6  ;;  %v706_v37 = vsel %vm694_vm3, %v704_v22, %v705_v29 }
  0x2b   : > { %v2728_v36 = vmax.f32 %v824_v28, %v2720_v24  ;;  %v319_v38 = vsel %vm307_vm0, %v317_v15, %v318_v30  ;;  %v448_v39 = vsel %vm436_vm1, %v446_v16, %v447_v31  ;;  %v778_v42 = vsel %vm694_vm3, %v705_v29, -inf }
  0x2c   : > { %v668_v40 = vmax.f32 %v539_v32, %v577_v27  ;;  %v411_v41 = vmax.f32 %v250_v13, %v319_v38  ;;  %v392_v46 = vsel %vm307_vm0, -inf, %v320_v34  ;;  %v521_v48 = vsel %vm436_vm1, -inf, %v449_v35 }
  0x2d   : > { %937 = vst.msk [vmem:[%s2693_s22 + $0x8] sm:$0xff] %vm935_vm4, %v2728_v36  ;;  %v412_v47 = vmax.f32 %v251_v23, %v392_v46  ;;  %v578_v49 = vrot.slane %v251_v23, 1  ;;  %v579_v50 = vrot.slane %v252_v43, 1  ;;  %v707_v54 = vrot.slane %v251_v23, 2 }
  0x2e   : > { %v2740_v51 = vmax.f32 %v668_v40, %v706_v37  ;;  %v540_v52 = vmax.f32 %v411_v41, %v448_v39  ;;  %v708_v55 = vrot.slane %v252_v43, 2  ;;  %v825_v58 = vmax.f32 %v2683_v53, %v2678_v45  ;;  %v254_v39 = vld [vmem:[%s2632_s19 + $0x58] sm:$0xff]  ;;  %v261_v41 = vld [vmem:[%s2632_s19 + $0x90] sm:$0xff] }
  0x2f   : > { %v541_v56 = vmax.f32 %v412_v47, %v521_v48  ;;  %v580_v57 = vsel %vm565_vm2, %v578_v49, %v579_v50  ;;  %v321_v59 = vrot.slane %v252_v43, 7  ;;  %v450_v0 = vrot.slane %v252_v43, 6 }
  0x30   : > { %v2747_v60 = vmax.f32 %v2699_v61, %v2740_v51  ;;  %v669_v62 = vmax.f32 %v540_v52, %v649_v33  ;;  %v709_v63 = vsel %vm694_vm3, %v707_v54, %v708_v55  ;;  %v853_v2 = vmax.f32 %v825_v58, %v2676_v44 }
  0x31   : > { %v670_v1 = vmax.f32 %v541_v56, %v580_v57  ;;  %v322_v3 = vsel %vm307_vm0, %v320_v34, %v321_v59  ;;  %v650_v4 = vsel %vm565_vm2, %v579_v50, -inf  ;;  %v451_v15 = vsel %vm436_vm1, %v449_v35, %v450_v0 }
  0x32   : > { %938 = vst.msk [vmem:[%s2693_s22 + $0x10] sm:$0xff] %vm935_vm4, %v2747_v60  ;;  %v1003_v7 = vrot.slane %v2747_v60, 7  ;;  %v2760_v8 = vmax.f32 %v669_v62, %v778_v42  ;;  %v883_v44 = vmax.f32 %v853_v2, %v2740_v51  ;;  %v413_v9 = vmax.f32 %v252_v43, %v322_v3  ;;  %v255_v3 = vld [vmem:[%s2632_s19 + $0x60] sm:$0xff] }
  0x33   : > { %v2762_v11 = vmax.f32 %v670_v1, %v709_v63  ;;  %v779_v14 = vsel %vm694_vm3, %v708_v55, -inf  ;;  %v826_v16 = vmax.f32 %v2720_v24, %v2716_v20  ;;  %v323_v25 = vrot.slane %v253_v12, 7 }
  0x34   : > { %v2767_v13 = vsel %vm307_vm0, -inf, %v1003_v7  ;;  %v2777_v18 = vmax.f32 %v2728_v36, %v2760_v8  ;;  %v542_v22 = vmax.f32 %v413_v9, %v451_v15  ;;  %v452_v26 = vrot.slane %v253_v12, 6 }
  0x35   : > { %v2780_v21 = vmax.f32 %v883_v44, %v2762_v11  ;;  %v854_v23 = vmax.f32 %v826_v16, %v2714_v19  ;;  %v581_v27 = vrot.slane %v253_v12, 1  ;;  %v393_v40 = vsel %vm307_vm0, -inf, %v323_v25 }
  0x36   : > { %939 = vst.msk [vmem:[%s2693_s22 + $0x18] sm:$0xff] %vm935_vm4, %v2777_v18  ;;  %v1004_v28 = vrot.slane %v2777_v18, 7  ;;  %v671_v37 = vmax.f32 %v542_v22, %v650_v4  ;;  %v414_v43 = vmax.f32 %v253_v12, %v393_v40  ;;  %v522_v46 = vsel %vm436_vm1, -inf, %v452_v26 }
  0x37   : > { %940 = vst.msk [vmem:[%s2693_s22 + $0x20] sm:$0xff] %vm935_vm4, %v2780_v21  ;;  %v1006_v19 = vrot.slane %v2780_v21, 7  ;;  %v884_v38 = vmax.f32 %v854_v23, %v2760_v8  ;;  %v582_v49 = vrot.slane %v254_v39, 1  ;;  %v710_v50 = vrot.slane %v253_v12, 2 }
  0x38   : > { %v2798_v35 = vsel %vm307_vm0, %v1003_v7, %v1004_v28  ;;  %v2811_v48 = vmax.f32 %v671_v37, %v779_v14  ;;  %v543_v52 = vmax.f32 %v414_v43, %v522_v46  ;;  %v711_v54 = vrot.slane %v254_v39, 2 }
  0x39   : > { %v2806_v42 = vsel %vm307_vm0, -inf, %v1006_v19  ;;  %v827_v55 = vmax.f32 %v2740_v51, %v2683_v53  ;;  %v324_v56 = vrot.slane %v254_v39, 7  ;;  %v583_v58 = vsel %vm565_vm2, %v581_v27, %v582_v49 }
  0x3a   : > { %v2816_v57 = vmax.f32 %v884_v38, %v2811_v48  ;;  %v453_v59 = vrot.slane %v254_v39, 6  ;;  %v651_v62 = vsel %vm565_vm2, %v582_v49, -inf  ;;  %v672_v63 = vmax.f32 %v543_v52, %v583_v58  ;;  %v256_v38 = vld [vmem:[%s2632_s19 + $0x68] sm:$0xff] }
  0x3b   : > { %v712_v0 = vsel %vm694_vm3, %v710_v50, %v711_v54  ;;  %v855_v1 = vmax.f32 %v827_v55, %v2678_v45  ;;  %v325_v2 = vsel %vm307_vm0, %v323_v25, %v324_v56  ;;  %v780_v22 = vsel %vm694_vm3, %v711_v54, -inf  ;;  %v259_v50 = vld [vmem:[%s2632_s19 + $0x80] sm:$0xff] }
  0x3c   : > { %941 = vst.msk [vmem:[%s2693_s22 + $0x28] sm:$0xff] %vm935_vm4, %v2816_v57  ;;  %v1007_v4 = vrot.slane %v2816_v57, 7  ;;  %v2831_v12 = vmax.f32 %v672_v63, %v712_v0  ;;  %v415_v45 = vmax.f32 %v254_v39, %v325_v2  ;;  %v454_v14 = vsel %vm436_vm1, %v452_v26, %v453_v59 }
  0x3d   : > { %v885_v15 = vmax.f32 %v855_v1, %v2762_v11  ;;  %v828_v23 = vmax.f32 %v2760_v8, %v2720_v24  ;;  %v326_v25 = vrot.slane %v255_v3, 7  ;;  %v455_v39 = vrot.slane %v255_v3, 6 }
  0x3e   : > { %v2836_v16 = vsel %vm307_vm0, %v1006_v19, %v1007_v4  ;;  %v544_v37 = vmax.f32 %v415_v45, %v454_v14  ;;  %v584_v40 = vrot.slane %v255_v3, 1  ;;  %v585_v43 = vrot.slane %v256_v38, 1 }
  0x3f   : > { %v2844_v28 = vmax.f32 %v885_v15, %v2831_v12  ;;  %v856_v26 = vmax.f32 %v828_v23, %v2716_v20  ;;  %v394_v19 = vsel %vm307_vm0, -inf, %v326_v25  ;;  %v523_v56 = vsel %vm436_vm1, -inf, %v455_v39 }
  0x40   : > { %v673_v52 = vmax.f32 %v544_v37, %v651_v62  ;;  %v416_v55 = vmax.f32 %v255_v3, %v394_v19  ;;  %v586_v20 = vsel %vm565_vm2, %v584_v40, %v585_v43  ;;  %v713_v63 = vrot.slane %v255_v3, 2  ;;  %v257_v19 = vld [vmem:[%s2632_s19 + $0x70] sm:$0xff] }
  0x41   : > { %942 = vst.msk [vmem:[%s2693_s22 + $0x30] sm:$0xff] %vm935_vm4, %v2844_v28  ;;  %v1009_v46 = vrot.slane %v2844_v28, 7  ;;  %v886_v54 = vmax.f32 %v856_v26, %v2811_v48  ;;  %v714_v0 = vrot.slane %v256_v38, 2  ;;  %v829_v2 = vmax.f32 %v2762_v11, %v2740_v51 }
  0x42   : > { %v2861_v59 = vmax.f32 %v673_v52, %v780_v22  ;;  %v545_v62 = vmax.f32 %v416_v55, %v523_v56  ;;  %v327_v4 = vrot.slane %v256_v38, 7  ;;  %v456_v14 = vrot.slane %v256_v38, 6 }
  0x43   : > { %v2859_v58 = vsel %vm307_vm0, -inf, %v1009_v46  ;;  %v715_v45 = vsel %vm694_vm3, %v713_v63, %v714_v0  ;;  %v652_v22 = vsel %vm565_vm2, %v585_v43, -inf  ;;  %v857_v3 = vmax.f32 %v829_v2, %v2683_v53 }
  0x44   : > { %v2868_v15 = vmax.f32 %v886_v54, %v2861_v59  ;;  %v674_v23 = vmax.f32 %v545_v62, %v586_v20  ;;  %v328_v37 = vsel %vm307_vm0, %v326_v25, %v327_v4  ;;  %v781_v26 = vsel %vm694_vm3, %v714_v0, -inf }
  0x45   : > { %v417_v55 = vmax.f32 %v256_v38, %v328_v37  ;;  %v887_v53 = vmax.f32 %v857_v3, %v2831_v12  ;;  %v457_v25 = vsel %vm436_vm1, %v455_v39, %v456_v14  ;;  %v830_v56 = vmax.f32 %v2811_v48, %v2760_v8 }
  0x46   : > { %943 = vst.msk [vmem:[%s2693_s22 + $0x38] sm:$0xff] %vm935_vm4, %v2868_v15  ;;  %v1010_v40 = vrot.slane %v2868_v15, 7  ;;  %v2882_v43 = vmax.f32 %v674_v23, %v715_v45  ;;  %v329_v0 = vrot.slane %v257_v19, 7  ;;  %v458_v62 = vrot.slane %v257_v19, 6  ;;  %v258_v45 = vld [vmem:[%s2632_s19 + $0x78] sm:$0xff] }
  0x47   : > { %v546_v63 = vmax.f32 %v417_v55, %v457_v25  ;;  %v858_v4 = vmax.f32 %v830_v56, %v2720_v24  ;;  %v587_v23 = vrot.slane %v257_v19, 1  ;;  %v716_v56 = vrot.slane %v257_v19, 2 }
  0x48   : > { %v2889_v20 = vsel %vm307_vm0, %v1009_v46, %v1010_v40  ;;  %v2894_v38 = vmax.f32 %v887_v53, %v2882_v43  ;;  %v395_v14 = vsel %vm307_vm0, -inf, %v329_v0  ;;  %v524_v3 = vsel %vm436_vm1, -inf, %v458_v62 }
  0x49   : > { %v675_v39 = vmax.f32 %v546_v63, %v652_v22  ;;  %v588_v46 = vrot.slane %v258_v45, 1  ;;  %v888_v53 = vmax.f32 %v858_v4, %v2861_v59  ;;  %v418_v22 = vmax.f32 %v257_v19, %v395_v14 }
  0x4a   : > { %944 = vst.msk [vmem:[%s2693_s22 + $0x40] sm:$0xff] %vm935_vm4, %v2894_v38  ;;  %v1012_v37 = vrot.slane %v2894_v38, 7  ;;  %v717_v2 = vrot.slane %v258_v45, 2  ;;  %v831_v52 = vmax.f32 %v2831_v12, %v2762_v11  ;;  %v330_v40 = vrot.slane %v258_v45, 7 }
  0x4b   : > { %v2907_v24 = vmax.f32 %v675_v39, %v781_v26  ;;  %v589_v25 = vsel %vm565_vm2, %v587_v23, %v588_v46  ;;  %v547_v4 = vmax.f32 %v418_v22, %v524_v3  ;;  %v459_v39 = vrot.slane %v258_v45, 6 }
  0x4c   : > { %v2911_v63 = vsel %vm307_vm0, -inf, %v1012_v37  ;;  %v718_v14 = vsel %vm694_vm3, %v716_v56, %v717_v2  ;;  %v859_v19 = vmax.f32 %v831_v52, %v2740_v51  ;;  %v331_v23 = vsel %vm307_vm0, %v329_v0, %v330_v40 }
  0x4d   : > { %v2918_v26 = vmax.f32 %v888_v53, %v2907_v24  ;;  %v653_v1 = vsel %vm565_vm2, %v588_v46, -inf  ;;  %v676_v22 = vmax.f32 %v547_v4, %v589_v25  ;;  %v419_v54 = vmax.f32 %v258_v45, %v331_v23 }
  0x4e   : > { %v889_v56 = vmax.f32 %v859_v19, %v2882_v43  ;;  %v460_v51 = vsel %vm436_vm1, %v458_v62, %v459_v39  ;;  %v782_v52 = vsel %vm694_vm3, %v717_v2, -inf  ;;  %v832_v40 = vmax.f32 %v2861_v59, %v2811_v48  ;;  %v260_v19 = vld [vmem:[%s2632_s19 + $0x88] sm:$0xff] }
  0x4f   : > { %945 = vst.msk [vmem:[%s2693_s22 + $0x48] sm:$0xff] %vm935_vm4, %v2918_v26  ;;  %v1013_v55 = vrot.slane %v2918_v26, 7  ;;  %v2937_v46 = vmax.f32 %v676_v22, %v718_v14  ;;  %v332_v53 = vrot.slane %v259_v50, 7  ;;  %v548_v4 = vmax.f32 %v419_v54, %v460_v51 }
  0x50   : > { %v461_v45 = vrot.slane %v259_v50, 6  ;;  %v590_v23 = vrot.slane %v259_v50, 1  ;;  %v860_v2 = vmax.f32 %v832_v40, %v2760_v8  ;;  %v719_v3 = vrot.slane %v259_v50, 2 }
  0x51   : > { %v2935_v0 = vsel %vm307_vm0, %v1012_v37, %v1013_v55  ;;  %v2945_v62 = vmax.f32 %v889_v56, %v2937_v46  ;;  %v396_v37 = vsel %vm307_vm0, -inf, %v332_v53  ;;  %v591_v55 = vrot.slane %v260_v19, 1 }
  0x52   : > { %v677_v39 = vmax.f32 %v548_v4, %v653_v1  ;;  %v420_v14 = vmax.f32 %v259_v50, %v396_v37  ;;  %v525_v22 = vsel %vm436_vm1, -inf, %v461_v45  ;;  %v890_v25 = vmax.f32 %v860_v2, %v2907_v24 }
  0x53   : > { %946 = vst.msk [vmem:[%s2693_s22 + $0x50] sm:$0xff] %vm935_vm4, %v2945_v62  ;;  %v1015_v54 = vrot.slane %v2945_v62, 7  ;;  %v592_v1 = vsel %vm565_vm2, %v590_v23, %v591_v55  ;;  %v720_v4 = vrot.slane %v260_v19, 2  ;;  %v833_v37 = vmax.f32 %v2882_v43, %v2831_v12 }
  0x54   : > { %v2957_v8 = vmax.f32 %v677_v39, %v782_v52  ;;  %v549_v40 = vmax.f32 %v420_v14, %v525_v22  ;;  %v333_v49 = vrot.slane %v260_v19, 7  ;;  %v462_v51 = vrot.slane %v260_v19, 6 }
  0x55   : > { %v2961_v50 = vsel %vm307_vm0, -inf, %v1015_v54  ;;  %v721_v39 = vsel %vm694_vm3, %v719_v3, %v720_v4  ;;  %v861_v23 = vmax.f32 %v833_v37, %v2762_v11  ;;  %v654_v27 = vsel %vm565_vm2, %v591_v55, -inf }
  0x56   : > { %v2968_v52 = vmax.f32 %v890_v25, %v2957_v8  ;;  %v678_v2 = vmax.f32 %v549_v40, %v592_v1  ;;  %v334_v14 = vsel %vm307_vm0, %v332_v53, %v333_v49  ;;  %v463_v22 = vsel %vm436_vm1, %v461_v45, %v462_v51 }
  0x57   : > { %v891_v11 = vmax.f32 %v861_v23, %v2937_v46  ;;  %v421_v49 = vmax.f32 %v260_v19, %v334_v14  ;;  %v783_v53 = vsel %vm694_vm3, %v720_v4, -inf  ;;  %v834_v45 = vmax.f32 %v2907_v24, %v2861_v59  ;;  %v262_v23 = vld [vmem:[%s2632_s19 + $0x98] sm:$0xff] }
  0x58   : > { %947 = vst.msk [vmem:[%s2693_s22 + $0x58] sm:$0xff] %vm935_vm4, %v2968_v52  ;;  %v1016_v56 = vrot.slane %v2968_v52, 7  ;;  %v2982_v3 = vmax.f32 %v678_v2, %v721_v39  ;;  %v335_v51 = vrot.slane %v261_v41, 7  ;;  %v464_v1 = vrot.slane %v261_v41, 6 }
  0x59   : > { %v593_v37 = vrot.slane %v261_v41, 1  ;;  %v550_v39 = vmax.f32 %v421_v49, %v463_v22  ;;  %v862_v19 = vmax.f32 %v834_v45, %v2811_v48  ;;  %v594_v40 = vrot.slane %v262_v23, 1 }
  0x5a   : > { %v2989_v55 = vsel %vm307_vm0, %v1015_v54, %v1016_v56  ;;  %v2994_v2 = vmax.f32 %v891_v11, %v2982_v3  ;;  %v397_v4 = vsel %vm307_vm0, -inf, %v335_v51  ;;  %v526_v14 = vsel %vm436_vm1, -inf, %v464_v1  ;;  %v263_v11 = vld [vmem:[%s2632_s19 + $0xa0] sm:$0xff] }
  0x5b   : > { %v722_v54 = vrot.slane %v261_v41, 2  ;;  %v679_v7 = vmax.f32 %v550_v39, %v654_v27  ;;  %v892_v22 = vmax.f32 %v862_v19, %v2957_v8  ;;  %v422_v48 = vmax.f32 %v261_v41, %v397_v4 }
  0x5c   : > { %948 = vst.msk [vmem:[%s2693_s22 + $0x60] sm:$0xff] %vm935_vm4, %v2994_v2  ;;  %v1018_v56 = vrot.slane %v2994_v2, 7  ;;  %v595_v49 = vsel %vm565_vm2, %v593_v37, %v594_v40  ;;  %v723_v45 = vrot.slane %v262_v23, 2  ;;  %v835_v9 = vmax.f32 %v2937_v46, %v2882_v43 }
  0x5d   : > { %v3011_v34 = vmax.f32 %v679_v7, %v783_v53  ;;  %v336_v25 = vrot.slane %v262_v23, 7  ;;  %v551_v39 = vmax.f32 %v422_v48, %v526_v14  ;;  %v465_v41 = vrot.slane %v262_v23, 6 }
  0x5e   : > { %v3009_v29 = vsel %vm307_vm0, -inf, %v1018_v56  ;;  %v724_v19 = vsel %vm694_vm3, %v722_v54, %v723_v45  ;;  %v863_v4 = vmax.f32 %v835_v9, %v2831_v12  ;;  %v655_v53 = vsel %vm565_vm2, %v594_v40, -inf }
  0x5f   : > { %v3019_v37 = vmax.f32 %v892_v22, %v3011_v34  ;;  %v337_v7 = vsel %vm307_vm0, %v335_v51, %v336_v25  ;;  %v680_v10 = vmax.f32 %v551_v39, %v595_v49  ;;  %v466_v33 = vsel %vm436_vm1, %v464_v1, %v465_v41  ;;  %v264_v1 = vld [vmem:[%s2632_s19 + $0xa8] sm:$0xff] }
  0x60   : > { %v423_v31 = vmax.f32 %v262_v23, %v337_v7  ;;  %v784_v14 = vsel %vm694_vm3, %v723_v45, -inf  ;;  %v893_v12 = vmax.f32 %v863_v4, %v2982_v3  ;;  %v836_v51 = vmax.f32 %v2957_v8, %v2907_v24 }
  0x61   : > { %949 = vst.msk [vmem:[%s2693_s22 + $0x68] sm:$0xff] %vm935_vm4, %v3019_v37  ;;  %v1019_v54 = vrot.slane %v3019_v37, 7  ;;  %v3034_v25 = vmax.f32 %v680_v10, %v724_v19  ;;  %v338_v23 = vrot.slane %v263_v11, 7  ;;  %v467_v49 = vrot.slane %v263_v11, 6 }
  0x62   : > { %v552_v40 = vmax.f32 %v423_v31, %v466_v33  ;;  %v596_v45 = vrot.slane %v263_v11, 1  ;;  %v597_v39 = vrot.slane %v264_v1, 1  ;;  %v864_v31 = vmax.f32 %v836_v51, %v2861_v59 }
  0x63   : > { %v3040_v48 = vsel %vm307_vm0, %v1018_v56, %v1019_v54  ;;  %v3045_v4 = vmax.f32 %v893_v12, %v3034_v25  ;;  %v398_v33 = vsel %vm307_vm0, -inf, %v338_v23  ;;  %v527_v19 = vsel %vm436_vm1, -inf, %v467_v49 }
  0x64   : > { %v681_v10 = vmax.f32 %v552_v40, %v655_v53  ;;  %v598_v7 = vsel %vm565_vm2, %v596_v45, %v597_v39  ;;  %v725_v56 = vrot.slane %v263_v11, 2  ;;  %v894_v59 = vmax.f32 %v864_v31, %v3011_v34  ;;  %v265_v31 = vld [vmem:[%s2632_s19 + $0xb0] sm:$0xff] }
  0x65   : > { %950 = vst.msk [vmem:[%s2693_s22 + $0x70] sm:$0xff] %vm935_vm4, %v3045_v4  ;;  %v1021_v54 = vrot.slane %v3045_v4, 7  ;;  %v424_v40 = vmax.f32 %v263_v11, %v398_v33  ;;  %v726_v51 = vrot.slane %v264_v1, 2  ;;  %v837_v45 = vmax.f32 %v2982_v3, %v2937_v46 }
  0x66   : > { %v3057_v53 = vmax.f32 %v681_v10, %v784_v14  ;;  %v339_v9 = vrot.slane %v264_v1, 7  ;;  %v468_v27 = vrot.slane %v264_v1, 6  ;;  %v656_v44 = vsel %vm565_vm2, %v597_v39, -inf }
  0x67   : > { %v3063_v22 = vsel %vm307_vm0, -inf, %v1021_v54  ;;  %v553_v10 = vmax.f32 %v424_v40, %v527_v19  ;;  %v727_v11 = vsel %vm694_vm3, %v725_v56, %v726_v51  ;;  %v865_v33 = vmax.f32 %v837_v45, %v2882_v43 }
  0x68   : > { %v3069_v14 = vmax.f32 %v894_v59, %v3057_v53  ;;  %v340_v41 = vsel %vm307_vm0, %v338_v23, %v339_v9  ;;  %v469_v6 = vsel %vm436_vm1, %v467_v49, %v468_v27  ;;  %v785_v30 = vsel %vm694_vm3, %v726_v51, -inf }
  0x69   : > { %v682_v56 = vmax.f32 %v553_v10, %v598_v7  ;;  %v895_v40 = vmax.f32 %v865_v33, %v3034_v25  ;;  %v425_v43 = vmax.f32 %v264_v1, %v340_v41  ;;  %v838_v9 = vmax.f32 %v3011_v34, %v2957_v8  ;;  %v266_v10 = vld [vmem:[%s2632_s19 + $0xb8] sm:$0xff] }
  0x6a   : > { %951 = vst.msk [vmem:[%s2693_s22 + $0x78] sm:$0xff] %vm935_vm4, %v3069_v14  ;;  %v1022_v39 = vrot.slane %v3069_v14, 7  ;;  %v341_v27 = vrot.slane %v265_v31, 7  ;;  %v470_v51 = vrot.slane %v265_v31, 6  ;;  %v599_v45 = vrot.slane %v265_v31, 1 }
  0x6b   : > { %v3089_v49 = vmax.f32 %v682_v56, %v727_v11  ;;  %v554_v19 = vmax.f32 %v425_v43, %v469_v6  ;;  %v866_v7 = vmax.f32 %v838_v9, %v2907_v24  ;;  %v600_v11 = vrot.slane %v266_v10, 1 }
  0x6c   : > { %v3087_v23 = vsel %vm307_vm0, %v1021_v54, %v1022_v39  ;;  %v399_v1 = vsel %vm307_vm0, -inf, %v341_v27  ;;  %v528_v54 = vsel %vm436_vm1, -inf, %v470_v51  ;;  %v728_v12 = vrot.slane %v265_v31, 2 }
  0x6d   : > { %v3097_v41 = vmax.f32 %v895_v40, %v3089_v49  ;;  %v426_v33 = vmax.f32 %v265_v31, %v399_v1  ;;  %v683_v39 = vmax.f32 %v554_v19, %v656_v44  ;;  %v896_v56 = vmax.f32 %v866_v7, %v3057_v53 }
  0x6e   : > { %v729_v47 = vrot.slane %v266_v10, 2  ;;  %v601_v1 = vsel %vm565_vm2, %v599_v45, %v600_v11  ;;  %v839_v31 = vmax.f32 %v3034_v25, %v2982_v3  ;;  %v342_v59 = vrot.slane %v266_v10, 7 }
  0x6f   : > { %952 = vst.msk [vmem:[%s2693_s22 + $0x80] sm:$0xff] %vm935_vm4, %v3097_v41  ;;  %v1024_v6 = vrot.slane %v3097_v41, 7  ;;  %v555_v43 = vmax.f32 %v426_v33, %v528_v54  ;;  %v3107_v9 = vmax.f32 %v683_v39, %v785_v30  ;;  %v471_v17 = vrot.slane %v266_v10, 6  ;;  %v267_v33 = vld [vmem:[%s2632_s19 + $0xc0] sm:$0xff] }
  0x70   : > { %v730_v44 = vsel %vm694_vm3, %v728_v12, %v729_v47  ;;  %v867_v45 = vmax.f32 %v839_v31, %v2937_v46  ;;  %v657_v12 = vsel %vm565_vm2, %v600_v11, -inf  ;;  %v343_v39 = vsel %vm307_vm0, %v341_v27, %v342_v59  ;;  %v268_v27 = vld [vmem:[%s2632_s19 + $0xc8] sm:$0xff] }
  0x71   : > { %v3114_v19 = vsel %vm307_vm0, -inf, %v1024_v6  ;;  %v684_v7 = vmax.f32 %v555_v43, %v601_v1  ;;  %v3119_v30 = vmax.f32 %v896_v56, %v3107_v9  ;;  %v472_v43 = vsel %vm436_vm1, %v470_v51, %v471_v17 }
  0x72   : > { %v786_v1 = vsel %vm694_vm3, %v729_v47, -inf  ;;  %v897_v11 = vmax.f32 %v867_v45, %v3089_v49  ;;  %v840_v59 = vmax.f32 %v3057_v53, %v3011_v34  ;;  %v344_v17 = vrot.slane %v267_v33, 7 }
  0x73   : > { %4739 = vst [vmem:[#allocation2_spill] sm:$0xff] %v3119_v30  ;;  %v3124_v54 = vmax.f32 %v684_v7, %v730_v44  ;;  %953 = vst.msk [vmem:[%s2693_s22 + $0x88] sm:$0xff] %vm935_vm4, %v3119_v30  ;;  %v1025_v40 = vrot.slane %v3119_v30, 7  ;;  %v427_v44 = vmax.f32 %v266_v10, %v343_v39  ;;  %v473_v51 = vrot.slane %v267_v33, 6 }
  0x74   : > { %v602_v7 = vrot.slane %v267_v33, 1  ;;  %v603_v56 = vrot.slane %v268_v27, 1  ;;  %v868_v10 = vmax.f32 %v840_v59, %v2957_v8  ;;  %v400_v45 = vsel %vm307_vm0, -inf, %v344_v17 }
  0x75   : > { %v3140_v47 = vsel %vm307_vm0, %v1024_v6, %v1025_v40  ;;  %v3143_v31 = vmax.f32 %v897_v11, %v3124_v54  ;;  %v556_v24 = vmax.f32 %v427_v44, %v472_v43  ;;  %v428_v11 = vmax.f32 %v267_v33, %v400_v45 }
  0x76   : > { %4740 = vst [vmem:[#allocation3_spill] sm:$0xff] %v3140_v47  ;;  %v898_v5 = vmax.f32 %v868_v10, %v3107_v9  ;;  %v529_v46 = vsel %vm436_vm1, -inf, %v473_v51  ;;  %v604_v43 = vsel %vm565_vm2, %v602_v7, %v603_v56  ;;  %v731_v59 = vrot.slane %v267_v33, 2 }
  0x77   : > { %4741 = vst [vmem:[#allocation4_spill] sm:$0xff] %v3143_v31  ;;  %954 = vst.msk [vmem:[%s2693_s22 + $0x90] sm:$0xff] %vm935_vm4, %v3143_v31  ;;  %v1027_v39 = vrot.slane %v3143_v31, 7  ;;  %v685_v32 = vmax.f32 %v556_v24, %v657_v12  ;;  %v557_v44 = vmax.f32 %v428_v11, %v529_v46  ;;  %v732_v47 = vrot.slane %v268_v27, 2  ;;  %v269_v11 = vld [vmem:[%s2632_s19 + $0xd0] sm:$0xff] }
  0x78   : > { %v841_v24 = vmax.f32 %v3089_v49, %v3034_v25  ;;  %v345_v12 = vrot.slane %v268_v27, 7  ;;  %v474_v45 = vrot.slane %v268_v27, 6  ;;  %v658_v40 = vsel %vm565_vm2, %v603_v56, -inf }
  0x79   : > { %v3159_v8 = vsel %vm307_vm0, -inf, %v1027_v39  ;;  %v3163_v30 = vmax.f32 %v685_v32, %v786_v1  ;;  %v686_v10 = vmax.f32 %v557_v44, %v604_v43  ;;  %v733_v7 = vsel %vm694_vm3, %v731_v59, %v732_v47  ;;  %v270_v59 = vld [vmem:[%s2632_s19 + $0xd8] sm:$0xff] }
  0x7a   : > { %4742 = vst [vmem:[#allocation5_spill] sm:$0xff] %v3159_v8  ;;  %v869_v33 = vmax.f32 %v841_v24, %v2982_v3  ;;  %v346_v32 = vsel %vm307_vm0, %v344_v17, %v345_v12  ;;  %v787_v1 = vsel %vm694_vm3, %v732_v47, -inf  ;;  %v475_v43 = vsel %vm436_vm1, %v473_v51, %v474_v45 }
  0x7b   : > { %v3170_v46 = vmax.f32 %v898_v5, %v3163_v30  ;;  %v3176_v6 = vmax.f32 %v686_v10, %v733_v7  ;;  %v429_v8 = vmax.f32 %v268_v27, %v346_v32  ;;  %v842_v44 = vmax.f32 %v3107_v9, %v3057_v53 }
  0x7c   : > { %v899_v17 = vmax.f32 %v869_v33, %v3124_v54  ;;  %v347_v51 = vrot.slane %v269_v11, 7  ;;  %v476_v24 = vrot.slane %v269_v11, 6  ;;  %v605_v7 = vrot.slane %v269_v11, 1 }
  0x7d   : > { %4743 = vst [vmem:[#allocation6_spill] sm:$0xff] %v3170_v46  ;;  %955 = vst.msk [vmem:[%s2693_s22 + $0x98] sm:$0xff] %vm935_vm4, %v3170_v46  ;;  %v1028_v5 = vrot.slane %v3170_v46, 7  ;;  %v558_v47 = vmax.f32 %v429_v8, %v475_v43  ;;  %v870_v27 = vmax.f32 %v842_v44, %v3011_v34  ;;  %v606_v45 = vrot.slane %v270_v59, 1 }
  0x7e   : > { %v3194_v10 = vmax.f32 %v899_v17, %v3176_v6  ;;  %v401_v8 = vsel %vm307_vm0, -inf, %v347_v51  ;;  %v530_v17 = vsel %vm436_vm1, -inf, %v476_v24  ;;  %v735_v56 = vrot.slane %v270_v59, 2 }
  0x7f   : > { %v3191_v12 = vsel %vm307_vm0, %v1027_v39, %v1028_v5  ;;  %v687_v3 = vmax.f32 %v558_v47, %v658_v40  ;;  %v900_v33 = vmax.f32 %v870_v27, %v3163_v30  ;;  %v430_v44 = vmax.f32 %v269_v11, %v401_v8 }
  0x80   : > { %4744 = vst [vmem:[#allocation7_spill] sm:$0xff] %v3191_v12  ;;  %4745 = vst [vmem:[#allocation8_spill] sm:$0xff] %v3194_v10  ;;  %v1030_v34 = vrot.slane %v3194_v10, 7  ;;  %v607_v40 = vsel %vm565_vm2, %v605_v7, %v606_v45  ;;  %v734_v47 = vrot.slane %v269_v11, 2  ;;  %v843_v39 = vmax.f32 %v3124_v54, %v3089_v49 }
  0x81   : > { %956 = vst.msk [vmem:[%s2693_s22 + $0xa0] sm:$0xff] %vm935_vm4, %v3194_v10  ;;  %v3206_v5 = vmax.f32 %v687_v3, %v787_v1  ;;  %v559_v32 = vmax.f32 %v430_v44, %v530_v17  ;;  %v348_v3 = vrot.slane %v270_v59, 7  ;;  %v477_v43 = vrot.slane %v270_v59, 6  ;;  %v271_v44 = vld [vmem:[%s2632_s19 + $0xe0] sm:$0xff] }
  0x82   : > { %v3211_v27 = vsel %vm307_vm0, -inf, %v1030_v34  ;;  %v736_v7 = vsel %vm694_vm3, %v734_v47, %v735_v56  ;;  %v871_v11 = vmax.f32 %v843_v39, %v3034_v25  ;;  %v659_v46 = vsel %vm565_vm2, %v606_v45, -inf }
  0x83   : > { %4746 = vst [vmem:[#allocation9_spill] sm:$0xff] %v3211_v27  ;;  %v3218_v1 = vmax.f32 %v900_v33, %v3206_v5  ;;  %v688_v12 = vmax.f32 %v559_v32, %v607_v40  ;;  %v349_v27 = vsel %vm307_vm0, %v347_v51, %v348_v3  ;;  %v478_v45 = vsel %vm436_vm1, %v476_v24, %v477_v43 }
  0x84   : > { %v901_v40 = vmax.f32 %v871_v11, %v3176_v6  ;;  %v431_v25 = vmax.f32 %v270_v59, %v349_v27  ;;  %v788_v47 = vsel %vm694_vm3, %v735_v56, -inf  ;;  %v844_v8 = vmax.f32 %v3163_v30, %v3107_v9 }
  0x85   : > { %4747 = vst [vmem:[#allocation10_spill] sm:$0xff] %v3218_v1  ;;  %957 = vst.msk [vmem:[%s2693_s22 + $0xa8] sm:$0xff] %vm935_vm4, %v3218_v1  ;;  %v1031_v17 = vrot.slane %v3218_v1, 7  ;;  %v3231_v32 = vmax.f32 %v688_v12, %v736_v7  ;;  %v350_v10 = vrot.slane %v271_v44, 7  ;;  %v272_v7 = vld [vmem:[%s2632_s19 + $0xe8] sm:$0xff]  ;;  %v479_v59 = vrot.slane %v271_v44, 6 }
  0x86   : > { %v560_v3 = vmax.f32 %v431_v25, %v478_v45  ;;  %v872_v24 = vmax.f32 %v844_v8, %v3057_v53  ;;  %v608_v43 = vrot.slane %v271_v44, 1  ;;  %v609_v27 = vrot.slane %v272_v7, 1 }
  0x87   : > { %v3236_v39 = vsel %vm307_vm0, %v1030_v34, %v1031_v17  ;;  %v3244_v12 = vmax.f32 %v901_v40, %v3231_v32  ;;  %v402_v34 = vsel %vm307_vm0, -inf, %v350_v10  ;;  %v531_v51 = vsel %vm436_vm1, -inf, %v479_v59 }
  0x88   : > { %4748 = vst [vmem:[#allocation11_spill] sm:$0xff] %v3236_v39  ;;  %v689_v40 = vmax.f32 %v560_v3, %v659_v46  ;;  %v902_v25 = vmax.f32 %v872_v24, %v3206_v5  ;;  %v432_v45 = vmax.f32 %v271_v44, %v402_v34  ;;  %v610_v53 = vsel %vm565_vm2, %v608_v43, %v609_v27 }
  0x89   : > { %4749 = vst [vmem:[#allocation12_spill] sm:$0xff] %v3244_v12  ;;  %958 = vst.msk [vmem:[%s2693_s22 + $0xb0] sm:$0xff] %vm935_vm4, %v3244_v12  ;;  %v1033_v56 = vrot.slane %v3244_v12, 7  ;;  %v737_v39 = vrot.slane %v271_v44, 2  ;;  %v738_v1 = vrot.slane %v272_v7, 2  ;;  %v845_v3 = vmax.f32 %v3176_v6, %v3124_v54 }
  0x8a   : > { %v3261_v33 = vmax.f32 %v689_v40, %v788_v47  ;;  %v561_v46 = vmax.f32 %v432_v45, %v531_v51  ;;  %v351_v24 = vrot.slane %v272_v7, 7  ;;  %v480_v11 = vrot.slane %v272_v7, 6  ;;  %v273_v51 = vld [vmem:[%s2632_s19 + $0xf0] sm:$0xff] }
  0x8b   : > { %v3259_v8 = vsel %vm307_vm0, -inf, %v1033_v56  ;;  %v739_v43 = vsel %vm694_vm3, %v737_v39, %v738_v1  ;;  %v660_v47 = vsel %vm565_vm2, %v609_v27, -inf  ;;  %v873_v44 = vmax.f32 %v845_v3, %v3089_v49 }
  0x8c   : > { %4750 = vst [vmem:[#allocation13_spill] sm:$0xff] %v3259_v8  ;;  %v3268_v34 = vmax.f32 %v902_v25, %v3261_v33  ;;  %v690_v40 = vmax.f32 %v561_v46, %v610_v53  ;;  %v352_v31 = vsel %vm307_vm0, %v350_v10, %v351_v24  ;;  %v789_v17 = vsel %vm694_vm3, %v738_v1, -inf }
  0x8d   : > { %v433_v8 = vmax.f32 %v272_v7, %v352_v31  ;;  %v903_v49 = vmax.f32 %v873_v44, %v3231_v32  ;;  %v481_v10 = vsel %vm436_vm1, %v479_v59, %v480_v11  ;;  %v846_v1 = vmax.f32 %v3206_v5, %v3163_v30 }
  0x8e   : > { %4751 = vst [vmem:[#allocation14_spill] sm:$0xff] %v3268_v34  ;;  %959 = vst.msk [vmem:[%s2693_s22 + $0xb8] sm:$0xff] %vm935_vm4, %v3268_v34  ;;  %v1034_v25 = vrot.slane %v3268_v34, 7  ;;  %v3282_v27 = vmax.f32 %v690_v40, %v739_v43  ;;  %v353_v3 = vrot.slane %v273_v51, 7  ;;  %v482_v24 = vrot.slane %v273_v51, 6  ;;  %v274_v43 = vld [vmem:[%s2632_s19 + $0xf8] sm:$0xff] }
  0x8f   : > { %v562_v46 = vmax.f32 %v433_v8, %v481_v10  ;;  %v874_v7 = vmax.f32 %v846_v1, %v3107_v9  ;;  %v611_v40 = vrot.slane %v273_v51, 1  ;;  %v741_v39 = vrot.slane %v274_v43, 2 }
  0x90   : > { %v3289_v53 = vsel %vm307_vm0, %v1033_v56, %v1034_v25  ;;  %v3294_v31 = vmax.f32 %v903_v49, %v3282_v27  ;;  %v403_v11 = vsel %vm307_vm0, -inf, %v353_v3  ;;  %v532_v44 = vsel %vm436_vm1, -inf, %v482_v24 }
  0x91   : > { %4752 = vst [vmem:[#allocation15_spill] sm:$0xff] %v3289_v53  ;;  %v691_v59 = vmax.f32 %v562_v46, %v660_v47  ;;  %v612_v56 = vrot.slane %v274_v43, 1  ;;  %v904_v10 = vmax.f32 %v874_v7, %v3261_v33  ;;  %v434_v47 = vmax.f32 %v273_v51, %v403_v11 }
  0x92   : > { %960 = vst.msk [vmem:[%s2693_s22 + $0xc0] sm:$0xff] %vm935_vm4, %v3294_v31  ;;  %v1036_v8 = vrot.slane %v3294_v31, 7  ;;  %v740_v46 = vrot.slane %v273_v51, 2  ;;  %v847_v53 = vmax.f32 %v3231_v32, %v3176_v6  ;;  %v354_v34 = vrot.slane %v274_v43, 7 }
  0x93   : > { %v3307_v9 = vmax.f32 %v691_v59, %v789_v17  ;;  %v613_v1 = vsel %vm565_vm2, %v611_v40, %v612_v56  ;;  %v563_v17 = vmax.f32 %v434_v47, %v532_v44  ;;  %v483_v59 = vrot.slane %v274_v43, 6 }
  0x94   : > { %v3311_v45 = vsel %vm307_vm0, -inf, %v1036_v8  ;;  %v742_v11 = vsel %vm694_vm3, %v740_v46, %v741_v39  ;;  %v875_v51 = vmax.f32 %v847_v53, %v3124_v54  ;;  %v355_v40 = vsel %vm307_vm0, %v353_v3, %v354_v34 }
  0x95   : > { %4753 = vst [vmem:[#allocation16_spill] sm:$0xff] %v3311_v45  ;;  %v3318_v7 = vmax.f32 %v904_v10, %v3307_v9  ;;  %v661_v25 = vsel %vm565_vm2, %v612_v56, -inf  ;;  %v692_v45 = vmax.f32 %v563_v17, %v613_v1  ;;  %v435_v47 = vmax.f32 %v274_v43, %v355_v40 }
  0x96   : > { %v905_v44 = vmax.f32 %v875_v51, %v3282_v27  ;;  %v484_v46 = vsel %vm436_vm1, %v482_v24, %v483_v59  ;;  %v790_v54 = vsel %vm694_vm3, %v741_v39, -inf  ;;  %v848_v3 = vmax.f32 %v3261_v33, %v3206_v5 }
  0x97   : > { %961 = vst.msk [vmem:[%s2693_s22 + $0xc8] sm:$0xff] %vm935_vm4, %v3318_v7  ;;  %v1037_v12 = vrot.slane %v3318_v7, 7  ;;  %v1165_v49 = vrot.slane %v3318_v7, 6  ;;  %v1293_v10 = vrot.slane %v3318_v7, 1  ;;  %v821_v53 = vmax.f32 %v692_v45, %v742_v11 }
  0x98   : > { %v849_v56 = vmax.f32 %v3282_v27, %v3231_v32  ;;  %v564_v17 = vmax.f32 %v435_v47, %v484_v46  ;;  %v850_v24 = vmax.f32 %v3307_v9, %v3261_v33  ;;  %v1000_v39 = vrot.slane %v2699_v61, 7 }
  0x99   : > { %v3334_v34 = vsel %vm307_vm0, %v1036_v8, %v1037_v12  ;;  %v3345_v43 = vmax.f32 %v905_v44, %v821_v53  ;;  %v876_v12 = vmax.f32 %v848_v3, %v3163_v30  ;;  %v851_v8 = vmax.f32 %v821_v53, %v3282_v27 }
  0x9a   : > { %v877_v45 = vmax.f32 %v849_v56, %v3176_v6  ;;  %v693_v59 = vmax.f32 %v564_v17, %v661_v25  ;;  %v878_v11 = vmax.f32 %v850_v24, %v3206_v5  ;;  %v1080_v51 = vsel %vm307_vm0, -inf, %v1000_v39 }
  0x9b   : > { %v1128_v40 = vrot.slane %v2699_v61, 6  ;;  %962 = vst.msk [vmem:[%s2693_s22 + $0xd0] sm:$0xff] %vm935_vm4, %v3345_v43  ;;  %v1039_v44 = vrot.slane %v3345_v43, 7  ;;  %v906_v27 = vmax.f32 %v876_v12, %v3307_v9  ;;  %v3363_v5 = vmax.f32 %v851_v8, %v3231_v32 }
  0x9c   : > { %v822_v25 = vmax.f32 %v693_v59, %v790_v54  ;;  %v3360_v47 = vmax.f32 %v877_v45, %v821_v53  ;;  %v1096_v46 = vmax.f32 %v2699_v61, %v1080_v51  ;;  %v4754_v17 = vrot.slane %v2747_v60, 6 }
  0x9d   : > { %v3367_v3 = vsel %vm307_vm0, -inf, %v1039_v44  ;;  %v1208_v56 = vsel %vm436_vm1, -inf, %v1128_v40  ;;  %v4755_v12 = vrot.slane %v2780_v21, 6  ;;  %966 = vst.msk [vmem:[%s2693_s22 + $0xf0] sm:$0xff] %vm935_vm4, %v3363_v5  ;;  %v4756_v51 = vmax.f32 %v2747_v60, %v2767_v13 }
  0x9e   : > { %v1209_v24 = vsel %vm436_vm1, -inf, %v4754_v17  ;;  %v3378_v53 = vmax.f32 %v906_v27, %v822_v25  ;;  %964 = vst.msk [vmem:[%s2693_s22 + $0xe0] sm:$0xff] %vm935_vm4, %v3360_v47  ;;  %v3383_v45 = vmax.f32 %v878_v11, %v822_v25  ;;  %v852_v8 = vmax.f32 %v822_v25, %v3307_v9 }
  0x9f   : > { %v1210_v54 = vsel %vm436_vm1, -inf, %v4755_v12  ;;  %v1224_v59 = vmax.f32 %v1096_v46, %v1208_v56  ;;  %v1226_v17 = vmax.f32 %v4756_v51, %v1209_v24  ;;  %v4757_v12 = vmax.f32 %v2780_v21, %v2806_v42 }
  0xa0   : > { %v1256_v6 = vrot.slane %v2699_v61, 1  ;;  %963 = vst.msk [vmem:[%s2693_s22 + $0xd8] sm:$0xff] %vm935_vm4, %v3378_v53  ;;  %v1040_v11 = vrot.slane %v3378_v53, 7  ;;  %965 = vst.msk [vmem:[%s2693_s22 + $0xe8] sm:$0xff] %vm935_vm4, %v3383_v45  ;;  %v3407_v42 = vmax.f32 %v852_v8, %v3261_v33  ;;  %v1257_v25 = vrot.slane %v2728_v36, 1 }
  0xa1   : > { %v1228_v27 = vmax.f32 %v4757_v12, %v1210_v54  ;;  %v4758_v46 = vrot.slane %v2777_v18, 1  ;;  %v4759_v56 = vrot.slane %v2747_v60, 1  ;;  %v4760_v54 = vrot.slane %v2816_v57, 1 }
  0xa2   : > { %v4761_v51 = vrot.slane %v2780_v21, 1  ;;  %v3421_v32 = vsel %vm307_vm0, %v1039_v44, %v1040_v11  ;;  %v1384_v8 = vrot.slane %v2699_v61, 2  ;;  %967 = vst.msk [vmem:[%s2693_s22 + $0xf8] sm:$0xff] %vm935_vm4, %v3407_v42  ;;  %v4762_v30 = vrot.slane %v2777_v18, 2 }
  0xa3   : > { %v1261_v24 = vsel %vm565_vm2, %v4759_v56, %v4758_v46  ;;  %v1258_v46 = vsel %vm565_vm2, %v1256_v6, %v1257_v25  ;;  %v1385_v56 = vrot.slane %v2728_v36, 2  ;;  %v4765_v61 = vrot.slane %v2780_v21, 2 }
  0xa4   : > { %v1264_v12 = vsel %vm565_vm2, %v4761_v51, %v4760_v54  ;;  %v1354_v13 = vmax.f32 %v1226_v17, %v1261_v24  ;;  %v4763_v54 = vrot.slane %v2747_v60, 2  ;;  %v1352_v17 = vmax.f32 %v1224_v59, %v1258_v46 }
  0xa5   : > { %v1356_v33 = vmax.f32 %v1228_v27, %v1264_v12  ;;  %v4764_v27 = vrot.slane %v2816_v57, 2  ;;  %v1001_v51 = vrot.slane %v2728_v36, 7  ;;  %v1386_v6 = vsel %vm694_vm3, %v1384_v8, %v1385_v56 }
  0xa6   : > { %v1389_v44 = vsel %vm694_vm3, %v4763_v54, %v4762_v30  ;;  %v1129_v9 = vrot.slane %v2728_v36, 6  ;;  %v4766_v30 = vrot.slane %v2777_v18, 6  ;;  %v4767_v59 = vrot.slane %v2747_v60, 6 }
  0xa7   : > { %v1392_v11 = vsel %vm694_vm3, %v4765_v61, %v4764_v27  ;;  %v3441_v24 = vmax.f32 %v1354_v13, %v1389_v44  ;;  %v1480_v54 = vmax.f32 %v1352_v17, %v1386_v6  ;;  %v1002_v27 = vsel %vm307_vm0, %v1000_v39, %v1001_v51 }
  0xa8   : > { %v3445_v12 = vmax.f32 %v1356_v33, %v1392_v11  ;;  %v1133_v46 = vsel %vm436_vm1, %v4767_v59, %v4766_v30  ;;  %v4768_v13 = vrot.slane %v2816_v57, 6  ;;  %v4769_v44 = vrot.slane %v2780_v21, 6 }
  0xa9   : > { %v4770_v33 = vmax.f32 %v2777_v18, %v2798_v35  ;;  %v1097_v11 = vmax.f32 %v2728_v36, %v1002_v27  ;;  %v1130_v1 = vsel %vm436_vm1, %v1128_v40, %v1129_v9  ;;  %v4771_v60 = vmax.f32 %v2816_v57, %v2836_v16 }
  0xaa   : > { %v1136_v8 = vsel %vm436_vm1, %v4769_v44, %v4768_v13  ;;  %v1336_v39 = vsel %vm565_vm2, %v1257_v25, -inf  ;;  %v1512_v51 = vmax.f32 %v3441_v24, %v1480_v54  ;;  %v4772_v21 = vrot.slane %v2777_v18, 1 }
  0xab   : > { %v1227_v61 = vmax.f32 %v4770_v33, %v1133_v46  ;;  %v1229_v17 = vmax.f32 %v4771_v60, %v1136_v8  ;;  %v4773_v30 = vrot.slane %v2816_v57, 1  ;;  %v1464_v36 = vsel %vm694_vm3, %v1385_v56, -inf }
  0xac   : > { %v1337_v6 = vsel %vm565_vm2, %v4772_v21, -inf  ;;  %v1225_v16 = vmax.f32 %v1097_v11, %v1130_v1  ;;  %v4774_v25 = vrot.slane %v2777_v18, 2  ;;  %v3486_v46 = vmax.f32 %v1512_v51, %v3445_v12 }
  0xad   : > { %v1338_v35 = vsel %vm565_vm2, %v4773_v30, -inf  ;;  %v1355_v40 = vmax.f32 %v1227_v61, %v1337_v6  ;;  %v4775_v27 = vrot.slane %v2816_v57, 2  ;;  %v4776_v13 = vrot.slane %v2844_v28, 6 }
  0xae   : > { %v1357_v9 = vmax.f32 %v1229_v17, %v1338_v35  ;;  %v1465_v59 = vsel %vm694_vm3, %v4774_v25, -inf  ;;  %v4777_v8 = vrot.slane %v2868_v15, 1  ;;  %v4778_v1 = vrot.slane %v2844_v28, 1  ;;  %1624 = vst.msk [vmem:[%s3480_s25] sm:$0xff] %vm935_vm4, %v3486_v46 }
  0xaf   : > { %v1466_v56 = vsel %vm694_vm3, %v4775_v27, -inf  ;;  %v1211_v44 = vsel %vm436_vm1, -inf, %v4776_v13  ;;  %v1353_v18 = vmax.f32 %v1225_v16, %v1336_v39  ;;  %v3499_v61 = vmax.f32 %v1355_v40, %v1465_v59 }
  0xb0   : > { %v1267_v33 = vsel %vm565_vm2, %v4778_v1, %v4777_v8  ;;  %v3501_v11 = vmax.f32 %v1357_v9, %v1466_v56  ;;  %v4779_v57 = vmax.f32 %v2844_v28, %v2859_v58  ;;  %v1393_v17 = vrot.slane %v2844_v28, 2 }
  0xb1   : > { %v1394_v51 = vrot.slane %v2868_v15, 2  ;;  %v4780_v21 = vrot.slane %v2868_v15, 6  ;;  %v4781_v6 = vmov %v4776_v13  ;;  %v4782_v30 = vmov %v4777_v8 }
  0xb2   : > { %v1230_v60 = vmax.f32 %v4779_v57, %v1211_v44  ;;  %v1339_v35 = vsel %vm565_vm2, %v4782_v30, -inf  ;;  %v1481_v16 = vmax.f32 %v1353_v18, %v1464_v36  ;;  %v4783_v40 = vmax.f32 %v2868_v15, %v2889_v20 }
  0xb3   : > { %v1139_v39 = vsel %vm436_vm1, %v4781_v6, %v4780_v21  ;;  %v4784_v25 = vrot.slane %v2894_v38, 6  ;;  %v1395_v27 = vsel %vm694_vm3, %v1393_v17, %v1394_v51  ;;  %v1467_v28 = vsel %vm694_vm3, %v1394_v51, -inf }
  0xb4   : > { %v1358_v58 = vmax.f32 %v1230_v60, %v1267_v33  ;;  %v1231_v9 = vmax.f32 %v4783_v40, %v1139_v39  ;;  %v4785_v56 = vmax.f32 %v2894_v38, %v2911_v63  ;;  %v4786_v44 = vrot.slane %v2918_v26, 1 }
  0xb5   : > { %v1212_v59 = vsel %vm436_vm1, -inf, %v4784_v25  ;;  %v4787_v36 = vrot.slane %v2894_v38, 1  ;;  %v1513_v15 = vmax.f32 %v3499_v61, %v1481_v16  ;;  %v1396_v33 = vrot.slane %v2894_v38, 2 }
  0xb6   : > { %v1232_v13 = vmax.f32 %v4785_v56, %v1212_v59  ;;  %v3536_v20 = vmax.f32 %v1358_v58, %v1395_v27  ;;  %v1359_v1 = vmax.f32 %v1231_v9, %v1339_v35  ;;  %v1397_v57 = vrot.slane %v2918_v26, 2 }
  0xb7   : > { %v1270_v8 = vsel %vm565_vm2, %v4787_v36, %v4786_v44  ;;  %v1514_v63 = vmax.f32 %v3445_v12, %v3441_v24  ;;  %v4788_v60 = vrot.slane %v2918_v26, 6  ;;  %v4789_v17 = vmov %v4784_v25 }
  0xb8   : > { %v1360_v18 = vmax.f32 %v1232_v13, %v1270_v8  ;;  %v3548_v21 = vmax.f32 %v1513_v15, %v3501_v11  ;;  %v3552_v6 = vmax.f32 %v3486_v46, %v3536_v20  ;;  %v3554_v39 = vmax.f32 %v1359_v1, %v1467_v28 }
  0xb9   : > { %v1142_v51 = vsel %vm436_vm1, %v4789_v17, %v4788_v60  ;;  %v4790_v30 = vmax.f32 %v2918_v26, %v2935_v0  ;;  %v1398_v58 = vsel %vm694_vm3, %v1396_v33, %v1397_v57  ;;  %v1542_v40 = vmax.f32 %v1514_v63, %v1480_v54 }
  0xba   : > { %v4791_v38 = vmov %v4786_v44  ;;  %v1468_v25 = vsel %vm694_vm3, %v1397_v57, -inf  ;;  %1625 = vst.msk [vmem:[%s3480_s25 + $0x8] sm:$0xff] %vm935_vm4, %v3548_v21  ;;  %1626 = vst.msk [vmem:[%s3480_s25 + $0x10] sm:$0xff] %vm935_vm4, %v3552_v6  ;;  %v3572_v0 = vmax.f32 %v3548_v21, %v3554_v39  ;;  %v3574_v59 = vmax.f32 %v1360_v18, %v1398_v58 }
  0xbb   : > { %v1233_v35 = vmax.f32 %v4790_v30, %v1142_v51  ;;  %v1340_v9 = vsel %vm565_vm2, %v4791_v38, -inf  ;;  %v1515_v26 = vmax.f32 %v3501_v11, %v3499_v61  ;;  %v1572_v54 = vmax.f32 %v1542_v40, %v3536_v20 }
  0xbc   : > { %v4792_v28 = vrot.slane %v2945_v62, 6  ;;  %v4793_v13 = vrot.slane %v2968_v52, 1  ;;  %v4794_v44 = vrot.slane %v2945_v62, 1  ;;  %v1399_v8 = vrot.slane %v2945_v62, 2  ;;  %1627 = vst.msk [vmem:[%s3480_s25 + $0x18] sm:$0xff] %vm935_vm4, %v3572_v0 }
  0xbd   : > { %v1361_v27 = vmax.f32 %v1233_v35, %v1340_v9  ;;  %v1543_v1 = vmax.f32 %v1515_v26, %v1481_v16  ;;  %v4795_v33 = vmax.f32 %v2945_v62, %v2961_v50  ;;  %v1400_v57 = vrot.slane %v2968_v52, 2 }
  0xbe   : > { %v1213_v56 = vsel %vm436_vm1, -inf, %v4792_v28  ;;  %v1273_v36 = vsel %vm565_vm2, %v4794_v44, %v4793_v13  ;;  %v3598_v63 = vmax.f32 %v1572_v54, %v3574_v59  ;;  %v1516_v60 = vmax.f32 %v3536_v20, %v3445_v12 }
  0xbf   : > { %v3591_v15 = vmax.f32 %v1361_v27, %v1468_v25  ;;  %v1234_v18 = vmax.f32 %v4795_v33, %v1213_v56  ;;  %v4796_v17 = vrot.slane %v2968_v52, 6  ;;  %v4797_v51 = vmov %v4792_v28 }
  0xc0   : > { %v4798_v16 = vmov %v4793_v13  ;;  %v1573_v50 = vmax.f32 %v1543_v1, %v3554_v39  ;;  %v1401_v40 = vsel %vm694_vm3, %v1399_v8, %v1400_v57  ;;  %v4799_v38 = vmax.f32 %v2968_v52, %v2989_v55  ;;  %1628 = vst.msk [vmem:[%s3480_s25 + $0x20] sm:$0xff] %vm935_vm4, %v3598_v63 }
  0xc1   : > { %v1145_v30 = vsel %vm436_vm1, %v4797_v51, %v4796_v17  ;;  %v1341_v35 = vsel %vm565_vm2, %v4798_v16, -inf  ;;  %v1362_v58 = vmax.f32 %v1234_v18, %v1273_v36  ;;  %v1544_v62 = vmax.f32 %v1516_v60, %v3441_v24 }
  0xc2   : > { %v1235_v9 = vmax.f32 %v4799_v38, %v1145_v30  ;;  %v1469_v25 = vsel %vm694_vm3, %v1400_v57, -inf  ;;  %v1517_v27 = vmax.f32 %v3554_v39, %v3501_v11  ;;  %v4800_v26 = vrot.slane %v2994_v2, 6 }
  0xc3   : > { %v3626_v28 = vmax.f32 %v1573_v50, %v3591_v15  ;;  %v3628_v56 = vmax.f32 %v1362_v58, %v1401_v40  ;;  %v4801_v55 = vmax.f32 %v2994_v2, %v3009_v29  ;;  %v1574_v24 = vmax.f32 %v1544_v62, %v3574_v59 }
  0xc4   : > { %v1214_v54 = vsel %vm436_vm1, -inf, %v4800_v26  ;;  %v1363_v52 = vmax.f32 %v1235_v9, %v1341_v35  ;;  %v1545_v44 = vmax.f32 %v1517_v27, %v3499_v61  ;;  %v4802_v36 = vrot.slane %v3019_v37, 1 }
  0xc5   : > { %v1236_v13 = vmax.f32 %v4801_v55, %v1214_v54  ;;  %v4803_v8 = vrot.slane %v2994_v2, 1  ;;  %v1402_v33 = vrot.slane %v2994_v2, 2  ;;  %1629 = vst.msk [vmem:[%s3480_s25 + $0x28] sm:$0xff] %vm935_vm4, %v3626_v28  ;;  %v1403_v57 = vrot.slane %v3019_v37, 2 }
  0xc6   : > { %v3644_v18 = vmax.f32 %v1363_v52, %v1469_v25  ;;  %v1518_v61 = vmax.f32 %v3574_v59, %v3536_v20  ;;  %v3650_v60 = vmax.f32 %v1574_v24, %v3628_v56  ;;  %v1575_v17 = vmax.f32 %v1545_v44, %v3591_v15 }
  0xc7   : > { %v1276_v1 = vsel %vm565_vm2, %v4803_v8, %v4802_v36  ;;  %v4804_v51 = vrot.slane %v3019_v37, 6  ;;  %v4805_v30 = vmov %v4800_v26  ;;  %v4806_v35 = vmov %v4802_v36 }
  0xc8   : > { %v1364_v29 = vmax.f32 %v1236_v13, %v1276_v1  ;;  %v1342_v50 = vsel %vm565_vm2, %v4806_v35, -inf  ;;  %v1404_v58 = vsel %vm694_vm3, %v1402_v33, %v1403_v57  ;;  %v1546_v40 = vmax.f32 %v1518_v61, %v3445_v12  ;;  %1630 = vst.msk [vmem:[%s3480_s25 + $0x30] sm:$0xff] %vm935_vm4, %v3650_v60 }
  0xc9   : > { %v1148_v16 = vsel %vm436_vm1, %v4805_v30, %v4804_v51  ;;  %v4807_v38 = vmax.f32 %v3019_v37, %v3040_v48  ;;  %v1470_v62 = vsel %vm694_vm3, %v1403_v57, -inf  ;;  %v3671_v2 = vmax.f32 %v1575_v17, %v3644_v18 }
  0xca   : > { %v3673_v25 = vmax.f32 %v1364_v29, %v1404_v58  ;;  %v1519_v27 = vmax.f32 %v3591_v15, %v3554_v39  ;;  %v4808_v26 = vrot.slane %v3045_v4, 6  ;;  %v1576_v37 = vmax.f32 %v1546_v40, %v3628_v56 }
  0xcb   : > { %v1237_v9 = vmax.f32 %v4807_v38, %v1148_v16  ;;  %v4809_v54 = vmax.f32 %v3045_v4, %v3063_v22  ;;  %v4810_v55 = vrot.slane %v3069_v14, 1  ;;  %v4811_v13 = vrot.slane %v3045_v4, 1  ;;  %1631 = vst.msk [vmem:[%s3480_s25 + $0x38] sm:$0xff] %vm935_vm4, %v3671_v2 }
  0xcc   : > { %v1215_v12 = vsel %vm436_vm1, -inf, %v4808_v26  ;;  %v1547_v44 = vmax.f32 %v1519_v27, %v3501_v11  ;;  %v1405_v36 = vrot.slane %v3045_v4, 2  ;;  %v1406_v8 = vrot.slane %v3069_v14, 2 }
  0xcd   : > { %v1365_v48 = vmax.f32 %v1237_v9, %v1342_v50  ;;  %v1238_v52 = vmax.f32 %v4809_v54, %v1215_v12  ;;  %v1279_v24 = vsel %vm565_vm2, %v4811_v13, %v4810_v55  ;;  %v1520_v22 = vmax.f32 %v3628_v56, %v3574_v59 }
  0xce   : > { %v3698_v1 = vmax.f32 %v1576_v37, %v3673_v25  ;;  %v4812_v57 = vrot.slane %v3069_v14, 6  ;;  %v4813_v61 = vmov %v4808_v26  ;;  %v1577_v11 = vmax.f32 %v1547_v44, %v3644_v18  ;;  %v4818_v37 = vld [vmem:[#allocation2_spill] sm:$0xff] }
  0xcf   : > { %v3700_v33 = vmax.f32 %v1365_v48, %v1470_v62  ;;  %v1366_v29 = vmax.f32 %v1238_v52, %v1279_v24  ;;  %v1407_v51 = vsel %vm694_vm3, %v1405_v36, %v1406_v8  ;;  %v1548_v30 = vmax.f32 %v1520_v22, %v3536_v20 }
  0xd0   : > { %v1151_v17 = vsel %vm436_vm1, %v4813_v61, %v4812_v57  ;;  %v4814_v16 = vmax.f32 %v3069_v14, %v3087_v23  ;;  %1632 = vst.msk [vmem:[%s3480_s25 + $0x40] sm:$0xff] %vm935_vm4, %v3698_v1  ;;  %v4815_v4 = vmov %v4810_v55  ;;  %v1471_v40 = vsel %vm694_vm3, %v1406_v8, -inf }
  0xd1   : > { %v3716_v50 = vmax.f32 %v1366_v29, %v1407_v51  ;;  %v1343_v58 = vsel %vm565_vm2, %v4815_v4, -inf  ;;  %v1521_v38 = vmax.f32 %v3644_v18, %v3591_v15  ;;  %v3725_v20 = vmax.f32 %v1577_v11, %v3700_v33  ;;  %v4824_v51 = vld [vmem:[#allocation3_spill] sm:$0xff] }
  0xd2   : > { %v1239_v35 = vmax.f32 %v4814_v16, %v1151_v17  ;;  %v1578_v23 = vmax.f32 %v1548_v30, %v3673_v25  ;;  %v4816_v62 = vrot.slane %v3097_v41, 6  ;;  %v4817_v26 = vmax.f32 %v3097_v41, %v3114_v19 }
  0xd3   : > { %v1549_v14 = vmax.f32 %v1521_v38, %v3554_v39  ;;  %v4819_v48 = vrot.slane %v4818_v37, 1  ;;  %v4820_v54 = vrot.slane %v3097_v41, 1  ;;  %v1408_v55 = vrot.slane %v3097_v41, 2  ;;  %1633 = vst.msk [vmem:[%s3480_s25 + $0x48] sm:$0xff] %vm935_vm4, %v3725_v20 }
  0xd4   : > { %v1367_v9 = vmax.f32 %v1239_v35, %v1343_v58  ;;  %v1216_v27 = vsel %vm436_vm1, -inf, %v4816_v62  ;;  %v3745_v13 = vmax.f32 %v1578_v23, %v3716_v50  ;;  %v1409_v39 = vrot.slane %v4818_v37, 2 }
  0xd5   : > { %v1240_v12 = vmax.f32 %v4817_v26, %v1216_v27  ;;  %v1282_v52 = vsel %vm565_vm2, %v4820_v54, %v4819_v48  ;;  %v1522_v19 = vmax.f32 %v3673_v25, %v3628_v56  ;;  %v1579_v44 = vmax.f32 %v1549_v14, %v3700_v33  ;;  %v4830_v26 = vld [vmem:[#allocation6_spill] sm:$0xff] }
  0xd6   : > { %v3747_v24 = vmax.f32 %v1367_v9, %v1471_v40  ;;  %v4821_v8 = vrot.slane %v4818_v37, 6  ;;  %v4822_v22 = vmov %v4816_v62  ;;  %v4823_v57 = vmov %v4819_v48  ;;  %1634 = vst.msk [vmem:[%s3480_s25 + $0x50] sm:$0xff] %vm935_vm4, %v3745_v13  ;;  %v4826_v40 = vld [vmem:[#allocation4_spill] sm:$0xff]  ;;  %v4828_v62 = vld [vmem:[#allocation5_spill] sm:$0xff] }
  0xd7   : > { %v1368_v36 = vmax.f32 %v1240_v12, %v1282_v52  ;;  %v1344_v61 = vsel %vm565_vm2, %v4823_v57, -inf  ;;  %v1410_v17 = vsel %vm694_vm3, %v1408_v55, %v1409_v39  ;;  %v1550_v11 = vmax.f32 %v1522_v19, %v3574_v59 }
  0xd8   : > { %v1154_v29 = vsel %vm436_vm1, %v4822_v22, %v4821_v8  ;;  %v4825_v30 = vmax.f32 %v4818_v37, %v4824_v51  ;;  %v1472_v41 = vsel %vm694_vm3, %v1409_v39, -inf  ;;  %v3771_v35 = vmax.f32 %v1579_v44, %v3747_v24 }
  0xd9   : > { %v3773_v4 = vmax.f32 %v1368_v36, %v1410_v17  ;;  %v1523_v58 = vmax.f32 %v3700_v33, %v3644_v18  ;;  %v4827_v38 = vrot.slane %v4826_v40, 6  ;;  %v1580_v59 = vmax.f32 %v1550_v11, %v3716_v50  ;;  %v4835_v17 = vld [vmem:[#allocation7_spill] sm:$0xff] }
  0xda   : > { %v1241_v16 = vmax.f32 %v4825_v30, %v1154_v29  ;;  %v4829_v27 = vmax.f32 %v4826_v40, %v4828_v62  ;;  %v4831_v12 = vrot.slane %v4830_v26, 1  ;;  %v4832_v37 = vrot.slane %v4826_v40, 1  ;;  %1635 = vst.msk [vmem:[%s3480_s25 + $0x58] sm:$0xff] %vm935_vm4, %v3771_v35 }
  0xdb   : > { %v1217_v23 = vsel %vm436_vm1, -inf, %v4827_v38  ;;  %v1551_v54 = vmax.f32 %v1523_v58, %v3591_v15  ;;  %v1411_v52 = vrot.slane %v4826_v40, 2  ;;  %v1412_v55 = vrot.slane %v4830_v26, 2 }
  0xdc   : > { %v1369_v9 = vmax.f32 %v1241_v16, %v1344_v61  ;;  %v1242_v14 = vmax.f32 %v4829_v27, %v1217_v23  ;;  %v1285_v48 = vsel %vm565_vm2, %v4832_v37, %v4831_v12  ;;  %v1524_v39 = vmax.f32 %v3716_v50, %v3673_v25  ;;  %v4842_v37 = vld [vmem:[#allocation10_spill] sm:$0xff] }
  0xdd   : > { %v3798_v19 = vmax.f32 %v1580_v59, %v3773_v4  ;;  %v4833_v8 = vrot.slane %v4830_v26, 6  ;;  %v4834_v22 = vmov %v4827_v38  ;;  %v1581_v15 = vmax.f32 %v1551_v54, %v3747_v24  ;;  %v4838_v59 = vld [vmem:[#allocation8_spill] sm:$0xff] }
  0xde   : > { %v3800_v44 = vmax.f32 %v1369_v9, %v1472_v41  ;;  %v1370_v36 = vmax.f32 %v1242_v14, %v1285_v48  ;;  %v1413_v57 = vsel %vm694_vm3, %v1411_v52, %v1412_v55  ;;  %v1552_v61 = vmax.f32 %v1524_v39, %v3628_v56  ;;  %v4840_v14 = vld [vmem:[#allocation9_spill] sm:$0xff] }
  0xdf   : > { %v1157_v29 = vsel %vm436_vm1, %v4834_v22, %v4833_v8  ;;  %v4836_v11 = vmax.f32 %v4830_v26, %v4835_v17  ;;  %1636 = vst.msk [vmem:[%s3480_s25 + $0x60] sm:$0xff] %vm935_vm4, %v3798_v19  ;;  %v4837_v16 = vmov %v4831_v12  ;;  %v1473_v58 = vsel %vm694_vm3, %v1412_v55, -inf }
  0xe0   : > { %v3816_v30 = vmax.f32 %v1370_v36, %v1413_v57  ;;  %v1345_v41 = vsel %vm565_vm2, %v4837_v16, -inf  ;;  %v1525_v40 = vmax.f32 %v3747_v24, %v3700_v33  ;;  %v3825_v56 = vmax.f32 %v1581_v15, %v3800_v44 }
  0xe1   : > { %v1243_v51 = vmax.f32 %v4836_v11, %v1157_v29  ;;  %v1582_v38 = vmax.f32 %v1552_v61, %v3773_v4  ;;  %v4839_v9 = vrot.slane %v4838_v59, 6  ;;  %v4841_v26 = vmax.f32 %v4838_v59, %v4840_v14 }
  0xe2   : > { %v1553_v27 = vmax.f32 %v1525_v40, %v3644_v18  ;;  %v4843_v48 = vrot.slane %v4842_v37, 1  ;;  %v4844_v54 = vrot.slane %v4838_v59, 1  ;;  %v1414_v55 = vrot.slane %v4838_v59, 2  ;;  %1637 = vst.msk [vmem:[%s3480_s25 + $0x68] sm:$0xff] %vm935_vm4, %v3825_v56 }
  0xe3   : > { %v1371_v23 = vmax.f32 %v1243_v51, %v1345_v41  ;;  %v1218_v62 = vsel %vm436_vm1, -inf, %v4839_v9  ;;  %v3845_v39 = vmax.f32 %v1582_v38, %v3816_v30  ;;  %v1415_v18 = vrot.slane %v4842_v37, 2  ;;  %v4848_v41 = vld [vmem:[#allocation11_spill] sm:$0xff] }
  0xe4   : > { %v1244_v12 = vmax.f32 %v4841_v26, %v1218_v62  ;;  %v1288_v52 = vsel %vm565_vm2, %v4844_v54, %v4843_v48  ;;  %v1526_v8 = vmax.f32 %v3773_v4, %v3716_v50  ;;  %v1583_v22 = vmax.f32 %v1553_v27, %v3800_v44  ;;  %v4850_v62 = vld [vmem:[#allocation12_spill] sm:$0xff]  ;;  %v4854_v54 = vld [vmem:[#allocation14_spill] sm:$0xff] }
  0xe5   : > { %v3847_v36 = vmax.f32 %v1371_v23, %v1473_v58  ;;  %v4845_v15 = vrot.slane %v4842_v37, 6  ;;  %v4846_v57 = vmov %v4839_v9  ;;  %v4847_v17 = vmov %v4843_v48  ;;  %1638 = vst.msk [vmem:[%s3480_s25 + $0x70] sm:$0xff] %vm935_vm4, %v3845_v39 }
  0xe6   : > { %v1372_v29 = vmax.f32 %v1244_v12, %v1288_v52  ;;  %v1346_v11 = vsel %vm565_vm2, %v4847_v17, -inf  ;;  %v1416_v51 = vsel %vm694_vm3, %v1414_v55, %v1415_v18  ;;  %v1554_v16 = vmax.f32 %v1526_v8, %v3673_v25  ;;  %v4852_v12 = vld [vmem:[#allocation13_spill] sm:$0xff] }
  0xe7   : > { %v1160_v61 = vsel %vm436_vm1, %v4846_v57, %v4845_v15  ;;  %v4849_v58 = vmax.f32 %v4842_v37, %v4848_v41  ;;  %v1474_v38 = vsel %vm694_vm3, %v1415_v18, -inf  ;;  %v3871_v23 = vmax.f32 %v1583_v22, %v3847_v36 }
  0xe8   : > { %v3873_v59 = vmax.f32 %v1372_v29, %v1416_v51  ;;  %v1527_v9 = vmax.f32 %v3800_v44, %v3747_v24  ;;  %v4851_v27 = vrot.slane %v4850_v62, 6  ;;  %v1584_v25 = vmax.f32 %v1554_v16, %v3816_v30 }
  0xe9   : > { %v1245_v40 = vmax.f32 %v4849_v58, %v1160_v61  ;;  %v4853_v37 = vmax.f32 %v4850_v62, %v4852_v12  ;;  %v4855_v52 = vrot.slane %v4854_v54, 1  ;;  %v4856_v55 = vrot.slane %v4850_v62, 1  ;;  %1639 = vst.msk [vmem:[%s3480_s25 + $0x78] sm:$0xff] %vm935_vm4, %v3871_v23 }
  0xea   : > { %v1219_v14 = vsel %vm436_vm1, -inf, %v4851_v27  ;;  %v1555_v8 = vmax.f32 %v1527_v9, %v3700_v33  ;;  %v1417_v22 = vrot.slane %v4850_v62, 2  ;;  %v1418_v29 = vrot.slane %v4854_v54, 2 }
  0xeb   : > { %v1373_v26 = vmax.f32 %v1245_v40, %v1346_v11  ;;  %v1246_v48 = vmax.f32 %v4853_v37, %v1219_v14  ;;  %v1291_v18 = vsel %vm565_vm2, %v4856_v55, %v4855_v52  ;;  %v1528_v15 = vmax.f32 %v3816_v30, %v3773_v4  ;;  %v4859_v40 = vld [vmem:[#allocation15_spill] sm:$0xff]  ;;  %v4863_v55 = vld [vmem:[#allocation16_spill] sm:$0xff] }
  0xec   : > { %v3898_v57 = vmax.f32 %v1584_v25, %v3873_v59  ;;  %v4857_v11 = vrot.slane %v4854_v54, 6  ;;  %v4858_v51 = vmov %v4851_v27  ;;  %v1585_v33 = vmax.f32 %v1555_v8, %v3847_v36 }
  0xed   : > { %v3900_v61 = vmax.f32 %v1373_v26, %v1474_v38  ;;  %v1374_v17 = vmax.f32 %v1246_v48, %v1291_v18  ;;  %v1419_v41 = vsel %vm694_vm3, %v1417_v22, %v1418_v29  ;;  %v1556_v58 = vmax.f32 %v1528_v15, %v3716_v50 }
  0xee   : > { %v1163_v16 = vsel %vm436_vm1, %v4858_v51, %v4857_v11  ;;  %v4860_v9 = vmax.f32 %v4854_v54, %v4859_v40  ;;  %1640 = vst.msk [vmem:[%s3480_s25 + $0x80] sm:$0xff] %vm935_vm4, %v3898_v57  ;;  %v4861_v62 = vmov %v4855_v52  ;;  %v1475_v25 = vsel %vm694_vm3, %v1418_v29, -inf }
  0xef   : > { %v3916_v38 = vmax.f32 %v1374_v17, %v1419_v41  ;;  %v1347_v14 = vsel %vm565_vm2, %v4861_v62, -inf  ;;  %v1529_v26 = vmax.f32 %v3847_v36, %v3800_v44  ;;  %v3925_v50 = vmax.f32 %v1585_v33, %v3900_v61 }
  0xf0   : > { %v1247_v27 = vmax.f32 %v4860_v9, %v1163_v16  ;;  %v1586_v12 = vmax.f32 %v1556_v58, %v3873_v59  ;;  %v4862_v48 = vrot.slane %v3294_v31, 6  ;;  %v4864_v18 = vmax.f32 %v3294_v31, %v4863_v55 }
  0xf1   : > { %v1557_v54 = vmax.f32 %v1529_v26, %v3747_v24  ;;  %v4865_v22 = vrot.slane %v3294_v31, 1  ;;  %v1420_v15 = vrot.slane %v3294_v31, 2  ;;  %1641 = vst.msk [vmem:[%s3480_s25 + $0x88] sm:$0xff] %vm935_vm4, %v3925_v50  ;;  %v1421_v24 = vrot.slane %v3318_v7, 2 }
  0xf2   : > { %v1375_v37 = vmax.f32 %v1247_v27, %v1347_v14  ;;  %v1220_v52 = vsel %vm436_vm1, -inf, %v4862_v48  ;;  %v3945_v17 = vmax.f32 %v1586_v12, %v3916_v38  ;;  %v1530_v51 = vmax.f32 %v3873_v59, %v3816_v30 }
  0xf3   : > { %v1248_v8 = vmax.f32 %v4864_v18, %v1220_v52  ;;  %v1294_v29 = vsel %vm565_vm2, %v4865_v22, %v1293_v10  ;;  %v1587_v16 = vmax.f32 %v1557_v54, %v3900_v61  ;;  %v4866_v41 = vmov %v4862_v48 }
  0xf4   : > { %v3947_v11 = vmax.f32 %v1375_v37, %v1475_v25  ;;  %v1166_v58 = vsel %vm436_vm1, %v4866_v41, %v1165_v49  ;;  %v1348_v40 = vsel %vm565_vm2, %v1293_v10, -inf  ;;  %1642 = vst.msk [vmem:[%s3480_s25 + $0x90] sm:$0xff] %vm935_vm4, %v3945_v17  ;;  %v1422_v9 = vsel %vm694_vm3, %v1420_v15, %v1421_v24 }
  0xf5   : > { %v1376_v33 = vmax.f32 %v1248_v8, %v1294_v29  ;;  %v1558_v27 = vmax.f32 %v1530_v51, %v3773_v4  ;;  %v4867_v62 = vmax.f32 %v3318_v7, %v3334_v34  ;;  %v1476_v31 = vsel %vm694_vm3, %v1421_v24, -inf }
  0xf6   : > { %v3971_v25 = vmax.f32 %v1587_v16, %v3947_v11  ;;  %v1531_v10 = vmax.f32 %v3900_v61, %v3847_v36  ;;  %v4868_v26 = vrot.slane %v3345_v43, 6  ;;  %v4869_v7 = vmax.f32 %v3345_v43, %v3367_v3 }
  0xf7   : > { %v1249_v14 = vmax.f32 %v4867_v62, %v1166_v58  ;;  %v3973_v49 = vmax.f32 %v1376_v33, %v1422_v9  ;;  %v1588_v4 = vmax.f32 %v1558_v27, %v3916_v38  ;;  %v4870_v48 = vrot.slane %v3378_v53, 1 }
  0xf8   : > { %v1221_v12 = vsel %vm436_vm1, -inf, %v4868_v26  ;;  %v4871_v52 = vrot.slane %v3345_v43, 1  ;;  %1643 = vst.msk [vmem:[%s3480_s25 + $0x98] sm:$0xff] %vm935_vm4, %v3971_v25  ;;  %v1559_v55 = vmax.f32 %v1531_v10, %v3800_v44  ;;  %v1423_v18 = vrot.slane %v3345_v43, 2 }
  0xf9   : > { %v1377_v37 = vmax.f32 %v1249_v14, %v1348_v40  ;;  %v1250_v34 = vmax.f32 %v4869_v7, %v1221_v12  ;;  %v1424_v8 = vrot.slane %v3378_v53, 2  ;;  %v1532_v3 = vmax.f32 %v3916_v38, %v3873_v59 }
  0xfa   : > { %v1297_v54 = vsel %vm565_vm2, %v4871_v52, %v4870_v48  ;;  %v3998_v22 = vmax.f32 %v1588_v4, %v3973_v49  ;;  %v4872_v24 = vrot.slane %v3378_v53, 6  ;;  %v4873_v51 = vmov %v4868_v26 }
  0xfb   : > { %v4000_v29 = vmax.f32 %v1377_v37, %v1476_v31  ;;  %v1378_v15 = vmax.f32 %v1250_v34, %v1297_v54  ;;  %v1589_v44 = vmax.f32 %v1559_v55, %v3947_v11  ;;  %v1425_v33 = vsel %vm694_vm3, %v1423_v18, %v1424_v8 }
  0xfc   : > { %v1169_v16 = vsel %vm436_vm1, %v4873_v51, %v4872_v24  ;;  %v1560_v41 = vmax.f32 %v1532_v3, %v3816_v30  ;;  %v4874_v58 = vmax.f32 %v3378_v53, %v3421_v32  ;;  %1644 = vst.msk [vmem:[%s3480_s25 + $0xa0] sm:$0xff] %vm935_vm4, %v3998_v22  ;;  %v4875_v43 = vmov %v4870_v48 }
  0xfd   : > { %v4016_v9 = vmax.f32 %v1378_v15, %v1425_v33  ;;  %v1349_v27 = vsel %vm565_vm2, %v4875_v43, -inf  ;;  %v1477_v62 = vsel %vm694_vm3, %v1424_v8, -inf  ;;  %v1533_v14 = vmax.f32 %v3947_v11, %v3900_v61 }
  0xfe   : > { %v1251_v40 = vmax.f32 %v4874_v58, %v1169_v16  ;;  %v4025_v30 = vmax.f32 %v1589_v44, %v4000_v29  ;;  %v1590_v32 = vmax.f32 %v1560_v41, %v3973_v49  ;;  %v1042_v10 = vrot.slane %v3360_v47, 7 }
  0xff   : > { %v1561_v26 = vmax.f32 %v1533_v14, %v3847_v36  ;;  %v1170_v53 = vrot.slane %v3360_v47, 6  ;;  %v1298_v12 = vrot.slane %v3360_v47, 1  ;;  %v1299_v4 = vrot.slane %v3383_v45, 1 }
 0x100   : > { %v1379_v31 = vmax.f32 %v1251_v40, %v1349_v27  ;;  %1645 = vst.msk [vmem:[%s3480_s25 + $0xa8] sm:$0xff] %vm935_vm4, %v4025_v30  ;;  %v4037_v37 = vmax.f32 %v1590_v32, %v4016_v9  ;;  %v1094_v34 = vsel %vm307_vm0, -inf, %v1042_v10  ;;  %v1426_v48 = vrot.slane %v3360_v47, 2 }
 0x101   : > { %v1591_v36 = vmax.f32 %v1561_v26, %v4000_v29  ;;  %v1124_v52 = vmax.f32 %v3360_v47, %v1094_v34  ;;  %v1222_v54 = vsel %vm436_vm1, -inf, %v1170_v53  ;;  %v1300_v55 = vsel %vm565_vm2, %v1298_v12, %v1299_v4 }
 0x102   : > { %v4039_v7 = vmax.f32 %v1379_v31, %v1477_v62  ;;  %1646 = vst.msk [vmem:[%s3480_s25 + $0xb0] sm:$0xff] %vm935_vm4, %v4037_v37  ;;  %v1427_v18 = vrot.slane %v3383_v45, 2  ;;  %v1534_v8 = vmax.f32 %v3973_v49, %v3916_v38  ;;  %v4876_v3 = vrot.slane %v3383_v45, 7 }
 0x103   : > { %v1171_v24 = vrot.slane %v3383_v45, 6  ;;  %v1252_v51 = vmax.f32 %v1124_v52, %v1222_v54  ;;  %v1350_v44 = vsel %vm565_vm2, %v1299_v4, -inf  ;;  %v1535_v62 = vmax.f32 %v4000_v29, %v3947_v11 }
 0x104   : > { %v1044_v15 = vsel %vm307_vm0, %v1042_v10, %v4876_v3  ;;  %v4058_v47 = vmax.f32 %v1591_v36, %v4039_v7  ;;  %v1428_v33 = vsel %vm694_vm3, %v1426_v48, %v1427_v18  ;;  %v1562_v41 = vmax.f32 %v1534_v8, %v3873_v59 }
 0x105   : > { %v1125_v16 = vmax.f32 %v3383_v45, %v1044_v15  ;;  %v1172_v58 = vsel %vm436_vm1, %v1170_v53, %v1171_v24  ;;  %v1478_v40 = vsel %vm694_vm3, %v1427_v18, -inf  ;;  %v1380_v43 = vmax.f32 %v1252_v51, %v1300_v55 }
 0x106   : > { %1647 = vst.msk [vmem:[%s3480_s25 + $0xb8] sm:$0xff] %vm935_vm4, %v4058_v47  ;;  %v1045_v45 = vrot.slane %v3363_v5, 7  ;;  %v1592_v14 = vmax.f32 %v1562_v41, %v4016_v9  ;;  %v1173_v32 = vrot.slane %v3363_v5, 6  ;;  %v1301_v59 = vrot.slane %v3363_v5, 1 }
 0x107   : > { %v1253_v27 = vmax.f32 %v1125_v16, %v1172_v58  ;;  %v1302_v31 = vrot.slane %v3407_v42, 1  ;;  %v1508_v10 = vmax.f32 %v1380_v43, %v1428_v33  ;;  %v1563_v53 = vmax.f32 %v1535_v62, %v3900_v61 }
 0x108   : > { %v1095_v12 = vsel %vm307_vm0, -inf, %v1045_v45  ;;  %v1223_v34 = vsel %vm436_vm1, -inf, %v1173_v32  ;;  %v1429_v36 = vrot.slane %v3363_v5, 2  ;;  %v1430_v18 = vrot.slane %v3407_v42, 2 }
 0x109   : > { %v1381_v26 = vmax.f32 %v1253_v27, %v1350_v44  ;;  %v1126_v4 = vmax.f32 %v3363_v5, %v1095_v12  ;;  %v1303_v48 = vsel %vm565_vm2, %v1301_v59, %v1302_v31  ;;  %v4082_v52 = vmax.f32 %v1592_v14, %v1508_v10 }
 0x10a   : > { %v1593_v55 = vmax.f32 %v1563_v53, %v4039_v7  ;;  %v1536_v8 = vmax.f32 %v4016_v9, %v3973_v49  ;;  %v1046_v3 = vrot.slane %v3407_v42, 7  ;;  %v1174_v15 = vrot.slane %v3407_v42, 6 }
 0x10b   : > { %v4084_v54 = vmax.f32 %v1381_v26, %v1478_v40  ;;  %v1254_v61 = vmax.f32 %v1126_v4, %v1223_v34  ;;  %1648 = vst.msk [vmem:[%s3480_s25 + $0xc0] sm:$0xff] %vm935_vm4, %v4082_v52  ;;  %v1431_v24 = vsel %vm694_vm3, %v1429_v36, %v1430_v18  ;;  %v1351_v51 = vsel %vm565_vm2, %v1302_v31, -inf }
 0x10c   : > { %v1479_v16 = vsel %vm694_vm3, %v1430_v18, -inf  ;;  %v1564_v33 = vmax.f32 %v1536_v8, %v3916_v38  ;;  %v1047_v41 = vsel %vm307_vm0, %v1045_v45, %v1046_v3  ;;  %v1175_v58 = vsel %vm436_vm1, %v1173_v32, %v1174_v15 }
 0x10d   : > { %v4096_v5 = vmax.f32 %v1593_v55, %v4084_v54  ;;  %v1382_v44 = vmax.f32 %v1254_v61, %v1303_v48  ;;  %v1127_v40 = vmax.f32 %v3407_v42, %v1047_v41  ;;  %v1537_v43 = vmax.f32 %v4039_v7, %v4000_v29 }
 0x10e   : > { %v1538_v27 = vmax.f32 %v1508_v10, %v4016_v9  ;;  %v1539_v62 = vmax.f32 %v4084_v54, %v4039_v7  ;;  %v1594_v38 = vmax.f32 %v1564_v33, %v1508_v10  ;;  %v1688_v45 = vrot.slane %v3486_v46, 7 }
 0x10f   : > { %1649 = vst.msk [vmem:[%s3480_s25 + $0xc8] sm:$0xff] %vm935_vm4, %v4096_v5  ;;  %v1510_v14 = vmax.f32 %v1382_v44, %v1431_v24  ;;  %v1691_v32 = vrot.slane %v3552_v6, 7  ;;  %v1255_v59 = vmax.f32 %v1127_v40, %v1175_v58  ;;  %v1565_v31 = vmax.f32 %v1537_v43, %v3947_v11 }
 0x110   : > { %v1566_v42 = vmax.f32 %v1538_v27, %v3973_v49  ;;  %v1567_v26 = vmax.f32 %v1539_v62, %v4000_v29  ;;  %v1694_v4 = vrot.slane %v3598_v63, 7  ;;  %v1768_v34 = vsel %vm307_vm0, -inf, %v1688_v45 }
 0x111   : > { %v4118_v53 = vmax.f32 %v1594_v38, %v1510_v14  ;;  %v1540_v12 = vmax.f32 %v1510_v14, %v1508_v10  ;;  %v1383_v48 = vmax.f32 %v1255_v59, %v1351_v51  ;;  %v1595_v36 = vmax.f32 %v1565_v31, %v4084_v54 }
 0x112   : > { %v4125_v55 = vmax.f32 %v1566_v42, %v1510_v14  ;;  %v1769_v11 = vsel %vm307_vm0, -inf, %v1691_v32  ;;  %v1770_v29 = vsel %vm307_vm0, -inf, %v1694_v4  ;;  %v1784_v10 = vmax.f32 %v3486_v46, %v1768_v34 }
 0x113   : > { %1650 = vst.msk [vmem:[%s3480_s25 + $0xd0] sm:$0xff] %vm935_vm4, %v4118_v53  ;;  %v4134_v49 = vmax.f32 %v1540_v12, %v4016_v9  ;;  %v1786_v18 = vmax.f32 %v3552_v6, %v1769_v11  ;;  %v1511_v61 = vmax.f32 %v1383_v48, %v1479_v16  ;;  %v1788_v8 = vmax.f32 %v3598_v63, %v1770_v29 }
 0x114   : > { %1652 = vst.msk [vmem:[%s3480_s25 + $0xe0] sm:$0xff] %vm935_vm4, %v4125_v55  ;;  %v1816_v3 = vrot.slane %v3486_v46, 6  ;;  %v1819_v9 = vrot.slane %v3552_v6, 6  ;;  %v1822_v15 = vrot.slane %v3598_v63, 6  ;;  %v1944_v24 = vrot.slane %v3486_v46, 1 }
 0x115   : > { %1654 = vst.msk [vmem:[%s3480_s25 + $0xf0] sm:$0xff] %vm935_vm4, %v4134_v49  ;;  %v1945_v51 = vrot.slane %v3548_v21, 1  ;;  %v1947_v16 = vrot.slane %v3552_v6, 1  ;;  %v4154_v44 = vmax.f32 %v1595_v36, %v1511_v61  ;;  %v4156_v33 = vmax.f32 %v1567_v26, %v1511_v61 }
 0x116   : > { %v1541_v41 = vmax.f32 %v1511_v61, %v4084_v54  ;;  %v1896_v58 = vsel %vm436_vm1, -inf, %v1816_v3  ;;  %v1897_v40 = vsel %vm436_vm1, -inf, %v1819_v9  ;;  %v1898_v43 = vsel %vm436_vm1, -inf, %v1822_v15 }
 0x117   : > { %v1912_v27 = vmax.f32 %v1784_v10, %v1896_v58  ;;  %v1946_v62 = vsel %vm565_vm2, %v1944_v24, %v1945_v51  ;;  %1651 = vst.msk [vmem:[%s3480_s25 + $0xd8] sm:$0xff] %vm935_vm4, %v4154_v44  ;;  %1653 = vst.msk [vmem:[%s3480_s25 + $0xe8] sm:$0xff] %vm935_vm4, %v4156_v33  ;;  %v1914_v54 = vmax.f32 %v1786_v18, %v1897_v40  ;;  %v1948_v59 = vrot.slane %v3572_v0, 1 }
 0x118   : > { %v4170_v14 = vmax.f32 %v1541_v41, %v4039_v7  ;;  %v1916_v38 = vmax.f32 %v1788_v8, %v1898_v43  ;;  %v1950_v31 = vrot.slane %v3598_v63, 1  ;;  %v1951_v42 = vrot.slane %v3626_v28, 1 }
 0x119   : > { %v2040_v26 = vmax.f32 %v1912_v27, %v1946_v62  ;;  %v2072_v12 = vrot.slane %v3486_v46, 2  ;;  %v1949_v34 = vsel %vm565_vm2, %v1947_v16, %v1948_v59  ;;  %v2073_v48 = vrot.slane %v3548_v21, 2 }
 0x11a   : > { %1655 = vst.msk [vmem:[%s3480_s25 + $0xf8] sm:$0xff] %vm935_vm4, %v4170_v14  ;;  %v2075_v7 = vrot.slane %v3552_v6, 2  ;;  %v2076_v36 = vrot.slane %v3572_v0, 2  ;;  %v1952_v11 = vsel %vm565_vm2, %v1950_v31, %v1951_v42  ;;  %v2042_v29 = vmax.f32 %v1914_v54, %v1949_v34 }
 0x11b   : > { %v2078_v10 = vrot.slane %v3598_v63, 2  ;;  %v2079_v18 = vrot.slane %v3626_v28, 2  ;;  %v2044_v61 = vmax.f32 %v1916_v38, %v1952_v11  ;;  %v2074_v8 = vsel %vm694_vm3, %v2072_v12, %v2073_v48 }
 0x11c   : > { %v2077_v24 = vsel %vm694_vm3, %v2075_v7, %v2076_v36  ;;  %v1689_v16 = vrot.slane %v3548_v21, 7  ;;  %v4190_v58 = vmax.f32 %v2040_v26, %v2074_v8  ;;  %v1692_v43 = vrot.slane %v3572_v0, 7 }
 0x11d   : > { %v2080_v41 = vsel %vm694_vm3, %v2078_v10, %v2079_v18  ;;  %v4192_v40 = vmax.f32 %v2042_v29, %v2077_v24  ;;  %v1695_v54 = vrot.slane %v3626_v28, 7  ;;  %v1817_v38 = vrot.slane %v3548_v21, 6 }
 0x11e   : > { %v4195_v27 = vmax.f32 %v2044_v61, %v2080_v41  ;;  %v1690_v62 = vsel %vm307_vm0, %v1688_v45, %v1689_v16  ;;  %v1693_v26 = vsel %vm307_vm0, %v1691_v32, %v1692_v43  ;;  %v1820_v34 = vrot.slane %v3572_v0, 6 }
 0x11f   : > { %v2200_v31 = vmax.f32 %v4192_v40, %v4190_v58  ;;  %v1785_v12 = vmax.f32 %v3548_v21, %v1690_v62  ;;  %v1696_v46 = vsel %vm307_vm0, %v1694_v4, %v1695_v54  ;;  %v1787_v45 = vmax.f32 %v3572_v0, %v1693_v26 }
 0x120   : > { %v1818_v6 = vsel %vm436_vm1, %v1816_v3, %v1817_v38  ;;  %v1823_v32 = vrot.slane %v3626_v28, 6  ;;  %v1789_v7 = vmax.f32 %v3626_v28, %v1696_v46  ;;  %v1821_v11 = vsel %vm436_vm1, %v1819_v9, %v1820_v34 }
 0x121   : > { %v4222_v21 = vmax.f32 %v2200_v31, %v4195_v27  ;;  %v1913_v29 = vmax.f32 %v1785_v12, %v1818_v6  ;;  %v1915_v63 = vmax.f32 %v1787_v45, %v1821_v11  ;;  %v2024_v61 = vsel %vm565_vm2, %v1945_v51, -inf }
 0x122   : > { %v1824_v10 = vsel %vm436_vm1, %v1822_v15, %v1823_v32  ;;  %v2025_v4 = vsel %vm565_vm2, %v1948_v59, -inf  ;;  %v2026_v3 = vsel %vm565_vm2, %v1951_v42, -inf  ;;  %v2152_v24 = vsel %vm694_vm3, %v2073_v48, -inf }
 0x123   : > { %2312 = vst.msk [vmem:[%s4213_s28] sm:$0xff] %vm935_vm4, %v4222_v21  ;;  %v1917_v0 = vmax.f32 %v1789_v7, %v1824_v10  ;;  %v2041_v8 = vmax.f32 %v1913_v29, %v2024_v61  ;;  %v2043_v28 = vmax.f32 %v1915_v63, %v2025_v4  ;;  %v2153_v9 = vsel %vm694_vm3, %v2076_v36, -inf }
 0x124   : > { %v2154_v16 = vsel %vm694_vm3, %v2079_v18, -inf  ;;  %v1697_v15 = vrot.slane %v3650_v60, 7  ;;  %v1825_v59 = vrot.slane %v3650_v60, 6  ;;  %v1953_v43 = vrot.slane %v3650_v60, 1 }
 0x125   : > { %v2045_v41 = vmax.f32 %v1917_v0, %v2026_v3  ;;  %v2169_v51 = vmax.f32 %v2041_v8, %v2152_v24  ;;  %v4239_v62 = vmax.f32 %v2043_v28, %v2153_v9  ;;  %v1954_v54 = vrot.slane %v3671_v2, 1 }
 0x126   : > { %v1771_v42 = vsel %vm307_vm0, -inf, %v1697_v15  ;;  %v2081_v48 = vrot.slane %v3650_v60, 2  ;;  %v1899_v18 = vsel %vm436_vm1, -inf, %v1825_v59  ;;  %v2082_v31 = vrot.slane %v3671_v2, 2 }
 0x127   : > { %v4244_v38 = vmax.f32 %v2045_v41, %v2154_v16  ;;  %v1790_v36 = vmax.f32 %v3650_v60, %v1771_v42  ;;  %v2201_v26 = vmax.f32 %v4239_v62, %v2169_v51  ;;  %v1955_v12 = vsel %vm565_vm2, %v1953_v43, %v1954_v54 }
 0x128   : > { %v1698_v34 = vrot.slane %v3671_v2, 7  ;;  %v1826_v46 = vrot.slane %v3671_v2, 6  ;;  %v2083_v6 = vsel %vm694_vm3, %v2081_v48, %v2082_v31  ;;  %v2027_v32 = vsel %vm565_vm2, %v1954_v54, -inf }
 0x129   : > { %v1918_v45 = vmax.f32 %v1790_v36, %v1899_v18  ;;  %v2155_v60 = vsel %vm694_vm3, %v2082_v31, -inf  ;;  %v2259_v7 = vmax.f32 %v2201_v26, %v4244_v38  ;;  %v1700_v10 = vrot.slane %v3698_v1, 7 }
 0x12a   : > { %v1699_v11 = vsel %vm307_vm0, %v1697_v15, %v1698_v34  ;;  %v1827_v29 = vsel %vm436_vm1, %v1825_v59, %v1826_v46  ;;  %v1828_v4 = vrot.slane %v3698_v1, 6  ;;  %v1956_v0 = vrot.slane %v3698_v1, 1 }
 0x12b   : > { %v2046_v63 = vmax.f32 %v1918_v45, %v1955_v12  ;;  %v1791_v61 = vmax.f32 %v3671_v2, %v1699_v11  ;;  %2313 = vst.msk [vmem:[%s4213_s28 + $0x8] sm:$0xff] %vm935_vm4, %v2259_v7  ;;  %v1772_v3 = vsel %vm307_vm0, -inf, %v1700_v10  ;;  %v1957_v8 = vrot.slane %v3725_v20, 1 }
 0x12c   : > { %v2084_v24 = vrot.slane %v3698_v1, 2  ;;  %v2085_v28 = vrot.slane %v3725_v20, 2  ;;  %v1792_v2 = vmax.f32 %v3698_v1, %v1772_v3  ;;  %v1900_v15 = vsel %vm436_vm1, -inf, %v1828_v4 }
 0x12d   : > { %v4269_v9 = vmax.f32 %v2046_v63, %v2083_v6  ;;  %v1919_v16 = vmax.f32 %v1791_v61, %v1827_v29  ;;  %v1958_v41 = vsel %vm565_vm2, %v1956_v0, %v1957_v8  ;;  %v2202_v43 = vmax.f32 %v4195_v27, %v4192_v40 }
 0x12e   : > { %v2086_v59 = vsel %vm694_vm3, %v2084_v24, %v2085_v28  ;;  %v1701_v42 = vrot.slane %v3725_v20, 7  ;;  %v1920_v36 = vmax.f32 %v1792_v2, %v1900_v15  ;;  %v1829_v18 = vrot.slane %v3725_v20, 6 }
 0x12f   : > { %v2286_v54 = vmax.f32 %v4222_v21, %v4269_v9  ;;  %v2047_v48 = vmax.f32 %v1919_v16, %v2027_v32  ;;  %v2230_v1 = vmax.f32 %v2202_v43, %v4190_v58  ;;  %v2028_v26 = vsel %vm565_vm2, %v1957_v8, -inf }
 0x130   : > { %v1702_v31 = vsel %vm307_vm0, %v1700_v10, %v1701_v42  ;;  %v2156_v12 = vsel %vm694_vm3, %v2085_v28, -inf  ;;  %v2048_v46 = vmax.f32 %v1920_v36, %v1958_v41  ;;  %v1830_v45 = vsel %vm436_vm1, %v1828_v4, %v1829_v18 }
 0x131   : > { %2314 = vst.msk [vmem:[%s4213_s28 + $0x10] sm:$0xff] %vm935_vm4, %v2286_v54  ;;  %v4287_v34 = vmax.f32 %v2047_v48, %v2155_v60  ;;  %v1793_v21 = vmax.f32 %v3725_v20, %v1702_v31  ;;  %v2260_v6 = vmax.f32 %v2230_v1, %v4269_v9  ;;  %v2203_v58 = vmax.f32 %v4244_v38, %v4239_v62 }
 0x132   : > { %v1703_v32 = vrot.slane %v3745_v13, 7  ;;  %v1831_v11 = vrot.slane %v3745_v13, 6  ;;  %v4297_v10 = vmax.f32 %v2048_v46, %v2086_v59  ;;  %v1959_v63 = vrot.slane %v3745_v13, 1 }
 0x133   : > { %v2287_v29 = vmax.f32 %v2259_v7, %v4287_v34  ;;  %v1921_v60 = vmax.f32 %v1793_v21, %v1830_v45  ;;  %v2231_v20 = vmax.f32 %v2203_v58, %v2169_v51  ;;  %v1960_v0 = vrot.slane %v3771_v35, 1 }
 0x134   : > { %v1773_v61 = vsel %vm307_vm0, -inf, %v1703_v32  ;;  %v1901_v4 = vsel %vm436_vm1, -inf, %v1831_v11  ;;  %v2288_v3 = vmax.f32 %v2260_v6, %v4297_v10  ;;  %v2087_v24 = vrot.slane %v3745_v13, 2 }
 0x135   : > { %2315 = vst.msk [vmem:[%s4213_s28 + $0x18] sm:$0xff] %vm935_vm4, %v2287_v29  ;;  %v2049_v8 = vmax.f32 %v1921_v60, %v2028_v26  ;;  %v1794_v7 = vmax.f32 %v3745_v13, %v1773_v61  ;;  %v2261_v28 = vmax.f32 %v2231_v20, %v4287_v34  ;;  %v1961_v16 = vsel %vm565_vm2, %v1959_v63, %v1960_v0 }
 0x136   : > { %v2088_v51 = vrot.slane %v3771_v35, 2  ;;  %v2204_v2 = vmax.f32 %v4269_v9, %v4195_v27  ;;  %2316 = vst.msk [vmem:[%s4213_s28 + $0x20] sm:$0xff] %vm935_vm4, %v2288_v3  ;;  %v1704_v59 = vrot.slane %v3771_v35, 7  ;;  %v1832_v43 = vrot.slane %v3771_v35, 6 }
 0x137   : > { %v4315_v15 = vmax.f32 %v2049_v8, %v2156_v12  ;;  %v1922_v41 = vmax.f32 %v1794_v7, %v1901_v4  ;;  %v2029_v54 = vsel %vm565_vm2, %v1960_v0, -inf  ;;  %v2205_v46 = vmax.f32 %v4287_v34, %v4244_v38 }
 0x138   : > { %v2089_v13 = vsel %vm694_vm3, %v2087_v24, %v2088_v51  ;;  %v2232_v42 = vmax.f32 %v2204_v2, %v4192_v40  ;;  %v2157_v48 = vsel %vm694_vm3, %v2088_v51, -inf  ;;  %v1705_v1 = vsel %vm307_vm0, %v1703_v32, %v1704_v59 }
 0x139   : > { %v2289_v36 = vmax.f32 %v2261_v28, %v4315_v15  ;;  %v2050_v18 = vmax.f32 %v1922_v41, %v1961_v16  ;;  %v1833_v31 = vsel %vm436_vm1, %v1831_v11, %v1832_v43  ;;  %v1795_v12 = vmax.f32 %v3771_v35, %v1705_v1 }
 0x13a   : > { %v2262_v26 = vmax.f32 %v2232_v42, %v4297_v10  ;;  %v1706_v40 = vrot.slane %v3798_v19, 7  ;;  %v1834_v45 = vrot.slane %v3798_v19, 6  ;;  %v1962_v6 = vrot.slane %v3798_v19, 1 }
 0x13b   : > { %2317 = vst.msk [vmem:[%s4213_s28 + $0x28] sm:$0xff] %vm935_vm4, %v2289_v36  ;;  %v4333_v21 = vmax.f32 %v2050_v18, %v2089_v13  ;;  %v1963_v58 = vrot.slane %v3825_v56, 1  ;;  %v1923_v32 = vmax.f32 %v1795_v12, %v1833_v31  ;;  %v2233_v11 = vmax.f32 %v2205_v46, %v4239_v62 }
 0x13c   : > { %v1774_v35 = vsel %vm307_vm0, -inf, %v1706_v40  ;;  %v2090_v29 = vrot.slane %v3798_v19, 2  ;;  %v1902_v20 = vsel %vm436_vm1, -inf, %v1834_v45  ;;  %v2091_v3 = vrot.slane %v3825_v56, 2 }
 0x13d   : > { %v2290_v60 = vmax.f32 %v2262_v26, %v4333_v21  ;;  %v1796_v63 = vmax.f32 %v3798_v19, %v1774_v35  ;;  %v1964_v61 = vsel %vm565_vm2, %v1962_v6, %v1963_v58  ;;  %v2051_v4 = vmax.f32 %v1923_v32, %v2029_v54 }
 0x13e   : > { %v2263_v0 = vmax.f32 %v2233_v11, %v4315_v15  ;;  %v2206_v62 = vmax.f32 %v4297_v10, %v4269_v9  ;;  %v1707_v7 = vrot.slane %v3825_v56, 7  ;;  %v1835_v24 = vrot.slane %v3825_v56, 6 }
 0x13f   : > { %2318 = vst.msk [vmem:[%s4213_s28 + $0x30] sm:$0xff] %vm935_vm4, %v2290_v60  ;;  %v1924_v8 = vmax.f32 %v1796_v63, %v1902_v20  ;;  %v2030_v19 = vsel %vm565_vm2, %v1963_v58, -inf  ;;  %v4354_v28 = vmax.f32 %v2051_v4, %v2157_v48  ;;  %v2092_v16 = vsel %vm694_vm3, %v2090_v29, %v2091_v3 }
 0x140   : > { %v2234_v51 = vmax.f32 %v2206_v62, %v4195_v27  ;;  %v2158_v2 = vsel %vm694_vm3, %v2091_v3, -inf  ;;  %v1708_v59 = vsel %vm307_vm0, %v1706_v40, %v1707_v7  ;;  %v1836_v43 = vsel %vm436_vm1, %v1834_v45, %v1835_v24 }
 0x141   : > { %v2052_v41 = vmax.f32 %v1924_v8, %v1964_v61  ;;  %v2207_v13 = vmax.f32 %v4315_v15, %v4287_v34  ;;  %v2291_v42 = vmax.f32 %v2263_v0, %v4354_v28  ;;  %v1797_v48 = vmax.f32 %v3825_v56, %v1708_v59 }
 0x142   : > { %v2264_v54 = vmax.f32 %v2234_v51, %v4333_v21  ;;  %v1709_v36 = vrot.slane %v3845_v39, 7  ;;  %v1837_v1 = vrot.slane %v3845_v39, 6  ;;  %v1965_v31 = vrot.slane %v3845_v39, 1 }
 0x143   : > { %v4367_v18 = vmax.f32 %v2052_v41, %v2092_v16  ;;  %v2235_v27 = vmax.f32 %v2207_v13, %v4244_v38  ;;  %2319 = vst.msk [vmem:[%s4213_s28 + $0x38] sm:$0xff] %vm935_vm4, %v2291_v42  ;;  %v1925_v26 = vmax.f32 %v1797_v48, %v1836_v43  ;;  %v1966_v46 = vrot.slane %v3871_v23, 1 }
 0x144   : > { %v1775_v12 = vsel %vm307_vm0, -inf, %v1709_v36  ;;  %v2093_v56 = vrot.slane %v3845_v39, 2  ;;  %v1903_v6 = vsel %vm436_vm1, -inf, %v1837_v1  ;;  %v2094_v11 = vrot.slane %v3871_v23, 2 }
 0x145   : > { %v2292_v40 = vmax.f32 %v2264_v54, %v4367_v18  ;;  %v2265_v45 = vmax.f32 %v2235_v27, %v4354_v28  ;;  %v1798_v38 = vmax.f32 %v3845_v39, %v1775_v12  ;;  %v2053_v58 = vmax.f32 %v1925_v26, %v2030_v19 }
 0x146   : > { %v1967_v32 = vsel %vm565_vm2, %v1965_v31, %v1966_v46  ;;  %v2208_v35 = vmax.f32 %v4333_v21, %v4297_v10  ;;  %v1710_v60 = vrot.slane %v3871_v23, 7  ;;  %v1838_v63 = vrot.slane %v3871_v23, 6 }
 0x147   : > { %2320 = vst.msk [vmem:[%s4213_s28 + $0x40] sm:$0xff] %vm935_vm4, %v2292_v40  ;;  %v1926_v29 = vmax.f32 %v1798_v38, %v1903_v6  ;;  %v2031_v20 = vsel %vm565_vm2, %v1966_v46, -inf  ;;  %v4390_v39 = vmax.f32 %v2053_v58, %v2158_v2  ;;  %v2095_v61 = vsel %vm694_vm3, %v2093_v56, %v2094_v11 }
 0x148   : > { %v2236_v4 = vmax.f32 %v2208_v35, %v4269_v9  ;;  %v2159_v0 = vsel %vm694_vm3, %v2094_v11, -inf  ;;  %v1711_v62 = vsel %vm307_vm0, %v1709_v36, %v1710_v60  ;;  %v1839_v8 = vsel %vm436_vm1, %v1837_v1, %v1838_v63 }
 0x149   : > { %v2054_v3 = vmax.f32 %v1926_v29, %v1967_v32  ;;  %v2209_v7 = vmax.f32 %v4354_v28, %v4315_v15  ;;  %v2293_v24 = vmax.f32 %v2265_v45, %v4390_v39  ;;  %v1799_v16 = vmax.f32 %v3871_v23, %v1711_v62 }
 0x14a   : > { %v2266_v19 = vmax.f32 %v2236_v4, %v4367_v18  ;;  %v1712_v51 = vrot.slane %v3898_v57, 7  ;;  %v1840_v41 = vrot.slane %v3898_v57, 6  ;;  %v1968_v59 = vrot.slane %v3898_v57, 1 }
 0x14b   : > { %v4403_v2 = vmax.f32 %v2054_v3, %v2095_v61  ;;  %v2237_v9 = vmax.f32 %v2209_v7, %v4287_v34  ;;  %2321 = vst.msk [vmem:[%s4213_s28 + $0x48] sm:$0xff] %vm935_vm4, %v2293_v24  ;;  %v1927_v43 = vmax.f32 %v1799_v16, %v1839_v8  ;;  %v1969_v42 = vrot.slane %v3925_v50, 1 }
 0x14c   : > { %v1776_v13 = vsel %vm307_vm0, -inf, %v1712_v51  ;;  %v2096_v23 = vrot.slane %v3898_v57, 2  ;;  %v1904_v36 = vsel %vm436_vm1, -inf, %v1840_v41  ;;  %v2097_v31 = vrot.slane %v3925_v50, 2 }
 0x14d   : > { %v2294_v54 = vmax.f32 %v2266_v19, %v4403_v2  ;;  %v2267_v48 = vmax.f32 %v2237_v9, %v4390_v39  ;;  %v1800_v34 = vmax.f32 %v3898_v57, %v1776_v13  ;;  %v2055_v27 = vmax.f32 %v1927_v43, %v2031_v20 }
 0x14e   : > { %v1970_v1 = vsel %vm565_vm2, %v1968_v59, %v1969_v42  ;;  %v2210_v26 = vmax.f32 %v4367_v18, %v4333_v21  ;;  %v1713_v46 = vrot.slane %v3925_v50, 7  ;;  %v1841_v56 = vrot.slane %v3925_v50, 6 }
 0x14f   : > { %2322 = vst.msk [vmem:[%s4213_s28 + $0x50] sm:$0xff] %vm935_vm4, %v2294_v54  ;;  %v1928_v12 = vmax.f32 %v1800_v34, %v1904_v36  ;;  %v2032_v40 = vsel %vm565_vm2, %v1969_v42, -inf  ;;  %v4426_v57 = vmax.f32 %v2055_v27, %v2159_v0  ;;  %v2098_v45 = vsel %vm694_vm3, %v2096_v23, %v2097_v31 }
 0x150   : > { %v2238_v38 = vmax.f32 %v2210_v26, %v4297_v10  ;;  %v2160_v6 = vsel %vm694_vm3, %v2097_v31, -inf  ;;  %v1714_v32 = vsel %vm307_vm0, %v1712_v51, %v1713_v46  ;;  %v1842_v11 = vsel %vm436_vm1, %v1840_v41, %v1841_v56 }
 0x151   : > { %v2056_v58 = vmax.f32 %v1928_v12, %v1970_v1  ;;  %v2211_v35 = vmax.f32 %v4390_v39, %v4354_v28  ;;  %v2295_v29 = vmax.f32 %v2267_v48, %v4426_v57  ;;  %v1801_v63 = vmax.f32 %v3925_v50, %v1714_v32 }
 0x152   : > { %v2268_v60 = vmax.f32 %v2238_v38, %v4403_v2  ;;  %v1715_v20 = vrot.slane %v3945_v17, 7  ;;  %v1843_v4 = vrot.slane %v3945_v17, 6  ;;  %v1971_v0 = vrot.slane %v3945_v17, 1 }
 0x153   : > { %v4439_v61 = vmax.f32 %v2056_v58, %v2098_v45  ;;  %v2239_v10 = vmax.f32 %v2211_v35, %v4315_v15  ;;  %2323 = vst.msk [vmem:[%s4213_s28 + $0x58] sm:$0xff] %vm935_vm4, %v2295_v29  ;;  %v1929_v3 = vmax.f32 %v1801_v63, %v1842_v11  ;;  %v1972_v8 = vrot.slane %v3971_v25, 1 }
 0x154   : > { %v1777_v62 = vsel %vm307_vm0, -inf, %v1715_v20  ;;  %v2099_v50 = vrot.slane %v3945_v17, 2  ;;  %v1905_v19 = vsel %vm436_vm1, -inf, %v1843_v4  ;;  %v2100_v9 = vrot.slane %v3971_v25, 2 }
 0x155   : > { %v2296_v7 = vmax.f32 %v2268_v60, %v4439_v61  ;;  %v2269_v24 = vmax.f32 %v2239_v10, %v4426_v57  ;;  %v1802_v15 = vmax.f32 %v3945_v17, %v1777_v62  ;;  %v2057_v16 = vmax.f32 %v1929_v3, %v2032_v40 }
 0x156   : > { %v1973_v51 = vsel %vm565_vm2, %v1971_v0, %v1972_v8  ;;  %v2212_v41 = vmax.f32 %v4403_v2, %v4367_v18  ;;  %v1716_v43 = vrot.slane %v3971_v25, 7  ;;  %v1844_v13 = vrot.slane %v3971_v25, 6 }
 0x157   : > { %2324 = vst.msk [vmem:[%s4213_s28 + $0x60] sm:$0xff] %vm935_vm4, %v2296_v7  ;;  %v1930_v59 = vmax.f32 %v1802_v15, %v1905_v19  ;;  %v2033_v42 = vsel %vm565_vm2, %v1972_v8, -inf  ;;  %v4462_v17 = vmax.f32 %v2057_v16, %v2160_v6  ;;  %v2101_v23 = vsel %vm694_vm3, %v2099_v50, %v2100_v9 }
 0x158   : > { %v2240_v54 = vmax.f32 %v2212_v41, %v4333_v21  ;;  %v2161_v48 = vsel %vm694_vm3, %v2100_v9, -inf  ;;  %v1717_v36 = vsel %vm307_vm0, %v1715_v20, %v1716_v43  ;;  %v1845_v27 = vsel %vm436_vm1, %v1843_v4, %v1844_v13 }
 0x159   : > { %v2058_v34 = vmax.f32 %v1930_v59, %v1973_v51  ;;  %v2213_v1 = vmax.f32 %v4426_v57, %v4390_v39  ;;  %v2297_v31 = vmax.f32 %v2269_v24, %v4462_v17  ;;  %v1803_v12 = vmax.f32 %v3971_v25, %v1717_v36 }
 0x15a   : > { %v2270_v26 = vmax.f32 %v2240_v54, %v4439_v61  ;;  %v1718_v46 = vrot.slane %v3998_v22, 7  ;;  %v1846_v40 = vrot.slane %v3998_v22, 6  ;;  %v1974_v45 = vrot.slane %v3998_v22, 1 }
 0x15b   : > { %v4475_v56 = vmax.f32 %v2058_v34, %v2101_v23  ;;  %v2241_v21 = vmax.f32 %v2213_v1, %v4354_v28  ;;  %2325 = vst.msk [vmem:[%s4213_s28 + $0x68] sm:$0xff] %vm935_vm4, %v2297_v31  ;;  %v1931_v38 = vmax.f32 %v1803_v12, %v1845_v27  ;;  %v1975_v58 = vrot.slane %v4025_v30, 1 }
 0x15c   : > { %v1778_v6 = vsel %vm307_vm0, -inf, %v1718_v46  ;;  %v2102_v25 = vrot.slane %v3998_v22, 2  ;;  %v1906_v35 = vsel %vm436_vm1, -inf, %v1846_v40  ;;  %v2103_v63 = vrot.slane %v4025_v30, 2 }
 0x15d   : > { %v2298_v32 = vmax.f32 %v2270_v26, %v4475_v56  ;;  %v2271_v11 = vmax.f32 %v2241_v21, %v4462_v17  ;;  %v1804_v28 = vmax.f32 %v3998_v22, %v1778_v6  ;;  %v2059_v29 = vmax.f32 %v1931_v38, %v2033_v42 }
 0x15e   : > { %v1976_v60 = vsel %vm565_vm2, %v1974_v45, %v1975_v58  ;;  %v2214_v20 = vmax.f32 %v4439_v61, %v4403_v2  ;;  %v1719_v4 = vrot.slane %v4025_v30, 7  ;;  %v1847_v0 = vrot.slane %v4025_v30, 6 }
 0x15f   : > { %2326 = vst.msk [vmem:[%s4213_s28 + $0x70] sm:$0xff] %vm935_vm4, %v2298_v32  ;;  %v1932_v10 = vmax.f32 %v1804_v28, %v1906_v35  ;;  %v2034_v3 = vsel %vm565_vm2, %v1975_v58, -inf  ;;  %v4498_v22 = vmax.f32 %v2059_v29, %v2161_v48  ;;  %v2104_v62 = vsel %vm694_vm3, %v2102_v25, %v2103_v63 }
 0x160   : > { %v2242_v8 = vmax.f32 %v2214_v20, %v4367_v18  ;;  %v2162_v50 = vsel %vm694_vm3, %v2103_v63, -inf  ;;  %v1720_v24 = vsel %vm307_vm0, %v1718_v46, %v1719_v4  ;;  %v1848_v15 = vsel %vm436_vm1, %v1846_v40, %v1847_v0 }
 0x161   : > { %v2060_v7 = vmax.f32 %v1932_v10, %v1976_v60  ;;  %v2215_v19 = vmax.f32 %v4462_v17, %v4426_v57  ;;  %v2299_v16 = vmax.f32 %v2271_v11, %v4498_v22  ;;  %v1805_v9 = vmax.f32 %v4025_v30, %v1720_v24 }
 0x162   : > { %v2272_v51 = vmax.f32 %v2242_v8, %v4475_v56  ;;  %v1721_v41 = vrot.slane %v4037_v37, 7  ;;  %v1849_v43 = vrot.slane %v4037_v37, 6  ;;  %v1977_v13 = vrot.slane %v4037_v37, 1 }
 0x163   : > { %v4511_v59 = vmax.f32 %v2060_v7, %v2104_v62  ;;  %v2243_v18 = vmax.f32 %v2215_v19, %v4390_v39  ;;  %2327 = vst.msk [vmem:[%s4213_s28 + $0x78] sm:$0xff] %vm935_vm4, %v2299_v16  ;;  %v1933_v42 = vmax.f32 %v1805_v9, %v1848_v15  ;;  %v1978_v54 = vrot.slane %v4058_v47, 1 }
 0x164   : > { %v1779_v23 = vsel %vm307_vm0, -inf, %v1721_v41  ;;  %v2105_v30 = vrot.slane %v4037_v37, 2  ;;  %v1907_v36 = vsel %vm436_vm1, -inf, %v1849_v43  ;;  %v2106_v31 = vrot.slane %v4058_v47, 2 }
 0x165   : > { %v2300_v48 = vmax.f32 %v2272_v51, %v4511_v59  ;;  %v2273_v34 = vmax.f32 %v2243_v18, %v4498_v22  ;;  %v1806_v39 = vmax.f32 %v4037_v37, %v1779_v23  ;;  %v2061_v27 = vmax.f32 %v1933_v42, %v2034_v3 }
 0x166   : > { %v1979_v1 = vsel %vm565_vm2, %v1977_v13, %v1978_v54  ;;  %v2216_v26 = vmax.f32 %v4475_v56, %v4439_v61  ;;  %v1722_v46 = vrot.slane %v4058_v47, 7  ;;  %v1850_v21 = vrot.slane %v4058_v47, 6 }
 0x167   : > { %2328 = vst.msk [vmem:[%s4213_s28 + $0x80] sm:$0xff] %vm935_vm4, %v2300_v48  ;;  %v1934_v12 = vmax.f32 %v1806_v39, %v1907_v36  ;;  %v2035_v40 = vsel %vm565_vm2, %v1978_v54, -inf  ;;  %v4534_v37 = vmax.f32 %v2061_v27, %v2162_v50  ;;  %v2107_v45 = vsel %vm694_vm3, %v2105_v30, %v2106_v31 }
 0x168   : > { %v2244_v38 = vmax.f32 %v2216_v26, %v4403_v2  ;;  %v2163_v6 = vsel %vm694_vm3, %v2106_v31, -inf  ;;  %v1723_v25 = vsel %vm307_vm0, %v1721_v41, %v1722_v46  ;;  %v1851_v32 = vsel %vm436_vm1, %v1849_v43, %v1850_v21 }
 0x169   : > { %v2062_v58 = vmax.f32 %v1934_v12, %v1979_v1  ;;  %v2217_v11 = vmax.f32 %v4498_v22, %v4462_v17  ;;  %v2301_v28 = vmax.f32 %v2273_v34, %v4534_v37  ;;  %v1807_v29 = vmax.f32 %v4058_v47, %v1723_v25 }
 0x16a   : > { %v2274_v35 = vmax.f32 %v2244_v38, %v4511_v59  ;;  %v1724_v60 = vrot.slane %v4082_v52, 7  ;;  %v1852_v20 = vrot.slane %v4082_v52, 6  ;;  %v1980_v10 = vrot.slane %v4082_v52, 1 }
 0x16b   : > { %v4547_v63 = vmax.f32 %v2062_v58, %v2107_v45  ;;  %v2245_v2 = vmax.f32 %v2217_v11, %v4426_v57  ;;  %2329 = vst.msk [vmem:[%s4213_s28 + $0x88] sm:$0xff] %vm935_vm4, %v2301_v28  ;;  %v1935_v4 = vmax.f32 %v1807_v29, %v1851_v32  ;;  %v1981_v3 = vrot.slane %v4096_v5, 1 }
 0x16c   : > { %v1780_v0 = vsel %vm307_vm0, -inf, %v1724_v60  ;;  %v2108_v47 = vrot.slane %v4082_v52, 2  ;;  %v1908_v50 = vsel %vm436_vm1, -inf, %v1852_v20  ;;  %v2109_v15 = vrot.slane %v4096_v5, 2 }
 0x16d   : > { %v2302_v62 = vmax.f32 %v2274_v35, %v4547_v63  ;;  %v2275_v8 = vmax.f32 %v2245_v2, %v4534_v37  ;;  %v1808_v57 = vmax.f32 %v4082_v52, %v1780_v0  ;;  %v2063_v7 = vmax.f32 %v1935_v4, %v2035_v40 }
 0x16e   : > { %v1982_v24 = vsel %vm565_vm2, %v1980_v10, %v1981_v3  ;;  %v2218_v19 = vmax.f32 %v4511_v59, %v4475_v56  ;;  %v1725_v51 = vrot.slane %v4096_v5, 7  ;;  %v1853_v9 = vrot.slane %v4096_v5, 6 }
 0x16f   : > { %2330 = vst.msk [vmem:[%s4213_s28 + $0x90] sm:$0xff] %vm935_vm4, %v2302_v62  ;;  %v1936_v16 = vmax.f32 %v1808_v57, %v1908_v50  ;;  %v2036_v41 = vsel %vm565_vm2, %v1981_v3, -inf  ;;  %v4570_v52 = vmax.f32 %v2063_v7, %v2163_v6  ;;  %v2110_v18 = vsel %vm694_vm3, %v2108_v47, %v2109_v15 }
 0x170   : > { %v2246_v43 = vmax.f32 %v2218_v19, %v4439_v61  ;;  %v2164_v13 = vsel %vm694_vm3, %v2109_v15, -inf  ;;  %v1726_v23 = vsel %vm307_vm0, %v1724_v60, %v1725_v51  ;;  %v1854_v54 = vsel %vm436_vm1, %v1852_v20, %v1853_v9 }
 0x171   : > { %v2064_v42 = vmax.f32 %v1936_v16, %v1982_v24  ;;  %v2219_v30 = vmax.f32 %v4534_v37, %v4498_v22  ;;  %v2303_v48 = vmax.f32 %v2275_v8, %v4570_v52  ;;  %v1809_v39 = vmax.f32 %v4096_v5, %v1726_v23 }
 0x172   : > { %v2276_v34 = vmax.f32 %v2246_v43, %v4547_v63  ;;  %v1727_v36 = vrot.slane %v4118_v53, 7  ;;  %v1855_v1 = vrot.slane %v4118_v53, 6  ;;  %v1983_v31 = vrot.slane %v4118_v53, 1 }
 0x173   : > { %v4583_v27 = vmax.f32 %v2064_v42, %v2110_v18  ;;  %v2247_v61 = vmax.f32 %v2219_v30, %v4462_v17  ;;  %2331 = vst.msk [vmem:[%s4213_s28 + $0x98] sm:$0xff] %vm935_vm4, %v2303_v48  ;;  %v1937_v26 = vmax.f32 %v1809_v39, %v1854_v54  ;;  %v1984_v46 = vrot.slane %v4154_v44, 1 }
 0x174   : > { %v1781_v12 = vsel %vm307_vm0, -inf, %v1727_v36  ;;  %v2111_v5 = vrot.slane %v4118_v53, 2  ;;  %v1909_v45 = vsel %vm436_vm1, -inf, %v1855_v1  ;;  %v2112_v58 = vrot.slane %v4154_v44, 2 }
 0x175   : > { %v2304_v21 = vmax.f32 %v2276_v34, %v4583_v27  ;;  %v2277_v40 = vmax.f32 %v2247_v61, %v4570_v52  ;;  %v1810_v17 = vmax.f32 %v4118_v53, %v1781_v12  ;;  %v2065_v38 = vmax.f32 %v1937_v26, %v2036_v41 }
 0x176   : > { %v1985_v6 = vsel %vm565_vm2, %v1983_v31, %v1984_v46  ;;  %v2220_v25 = vmax.f32 %v4547_v63, %v4511_v59  ;;  %v1728_v11 = vrot.slane %v4154_v44, 7  ;;  %v1856_v28 = vrot.slane %v4154_v44, 6 }
 0x177   : > { %2332 = vst.msk [vmem:[%s4213_s28 + $0xa0] sm:$0xff] %vm935_vm4, %v2304_v21  ;;  %v1938_v32 = vmax.f32 %v1810_v17, %v1909_v45  ;;  %v2037_v35 = vsel %vm565_vm2, %v1984_v46, -inf  ;;  %v4606_v53 = vmax.f32 %v2065_v38, %v2164_v13  ;;  %v2113_v29 = vsel %vm694_vm3, %v2111_v5, %v2112_v58 }
 0x178   : > { %v2248_v60 = vmax.f32 %v2220_v25, %v4475_v56  ;;  %v2165_v2 = vsel %vm694_vm3, %v2112_v58, -inf  ;;  %v1729_v10 = vsel %vm307_vm0, %v1727_v36, %v1728_v11  ;;  %v1857_v4 = vsel %vm436_vm1, %v1855_v1, %v1856_v28 }
 0x179   : > { %v2066_v20 = vmax.f32 %v1938_v32, %v1985_v6  ;;  %v2221_v0 = vmax.f32 %v4570_v52, %v4534_v37  ;;  %v2305_v3 = vmax.f32 %v2277_v40, %v4606_v53  ;;  %v1811_v62 = vmax.f32 %v4154_v44, %v1729_v10 }
 0x17a   : > { %v2278_v47 = vmax.f32 %v2248_v60, %v4583_v27  ;;  %v1730_v8 = vrot.slane %v4125_v55, 7  ;;  %v1858_v50 = vrot.slane %v4125_v55, 6  ;;  %v1986_v7 = vrot.slane %v4125_v55, 1 }
 0x17b   : > { %v4619_v57 = vmax.f32 %v2066_v20, %v2113_v29  ;;  %v2249_v56 = vmax.f32 %v2221_v0, %v4498_v22  ;;  %2333 = vst.msk [vmem:[%s4213_s28 + $0xa8] sm:$0xff] %vm935_vm4, %v2305_v3  ;;  %v1939_v24 = vmax.f32 %v1811_v62, %v1857_v4  ;;  %v1987_v19 = vrot.slane %v4156_v33, 1 }
 0x17c   : > { %v1782_v15 = vsel %vm307_vm0, -inf, %v1730_v8  ;;  %v2114_v44 = vrot.slane %v4125_v55, 2  ;;  %v1910_v9 = vsel %vm436_vm1, -inf, %v1858_v50  ;;  %v2115_v43 = vrot.slane %v4156_v33, 2 }
 0x17d   : > { %v2306_v16 = vmax.f32 %v2278_v47, %v4619_v57  ;;  %v2279_v51 = vmax.f32 %v2249_v56, %v4606_v53  ;;  %v1812_v22 = vmax.f32 %v4125_v55, %v1782_v15  ;;  %v2067_v41 = vmax.f32 %v1939_v24, %v2037_v35 }
 0x17e   : > { %v1988_v18 = vsel %vm565_vm2, %v1986_v7, %v1987_v19  ;;  %v2222_v13 = vmax.f32 %v4583_v27, %v4547_v63  ;;  %v1731_v23 = vrot.slane %v4156_v33, 7  ;;  %v1859_v54 = vrot.slane %v4156_v33, 6 }
 0x17f   : > { %2334 = vst.msk [vmem:[%s4213_s28 + $0xb0] sm:$0xff] %vm935_vm4, %v2306_v16  ;;  %v1940_v42 = vmax.f32 %v1812_v22, %v1910_v9  ;;  %v2038_v30 = vsel %vm565_vm2, %v1987_v19, -inf  ;;  %v4642_v55 = vmax.f32 %v2067_v41, %v2165_v2  ;;  %v2116_v48 = vsel %vm694_vm3, %v2114_v44, %v2115_v43 }
 0x180   : > { %v2250_v34 = vmax.f32 %v2222_v13, %v4511_v59  ;;  %v2166_v39 = vsel %vm694_vm3, %v2115_v43, -inf  ;;  %v1732_v61 = vsel %vm307_vm0, %v1730_v8, %v1731_v23  ;;  %v1860_v1 = vsel %vm436_vm1, %v1858_v50, %v1859_v54 }
 0x181   : > { %v2068_v36 = vmax.f32 %v1940_v42, %v1988_v18  ;;  %v2223_v31 = vmax.f32 %v4606_v53, %v4570_v52  ;;  %v2307_v26 = vmax.f32 %v2279_v51, %v4642_v55  ;;  %v1813_v46 = vmax.f32 %v4156_v33, %v1732_v61 }
 0x182   : > { %v2280_v12 = vmax.f32 %v2250_v34, %v4619_v57  ;;  %v1733_v5 = vrot.slane %v4134_v49, 7  ;;  %v1861_v40 = vrot.slane %v4134_v49, 6  ;;  %v1989_v17 = vrot.slane %v4134_v49, 1 }
 0x183   : > { %v2196_v21 = vmax.f32 %v2068_v36, %v2116_v48  ;;  %v2251_v59 = vmax.f32 %v2223_v31, %v4534_v37  ;;  %2335 = vst.msk [vmem:[%s4213_s28 + $0xb8] sm:$0xff] %vm935_vm4, %v2307_v26  ;;  %v1941_v45 = vmax.f32 %v1813_v46, %v1860_v1  ;;  %v1990_v6 = vrot.slane %v4170_v14, 1 }
 0x184   : > { %v1783_v38 = vsel %vm307_vm0, -inf, %v1733_v5  ;;  %v2117_v58 = vrot.slane %v4134_v49, 2  ;;  %v1911_v37 = vsel %vm436_vm1, -inf, %v1861_v40  ;;  %v2118_v35 = vrot.slane %v4170_v14, 2 }
 0x185   : > { %v2308_v33 = vmax.f32 %v2280_v12, %v2196_v21  ;;  %v2281_v25 = vmax.f32 %v2251_v59, %v4642_v55  ;;  %v1814_v32 = vmax.f32 %v4134_v49, %v1783_v38  ;;  %v2069_v11 = vmax.f32 %v1941_v45, %v2038_v30 }
 0x186   : > { %v1991_v28 = vsel %vm565_vm2, %v1989_v17, %v1990_v6  ;;  %v2224_v29 = vmax.f32 %v4619_v57, %v4583_v27  ;;  %v1734_v2 = vrot.slane %v4170_v14, 7  ;;  %v1862_v20 = vrot.slane %v4170_v14, 6 }
 0x187   : > { %2336 = vst.msk [vmem:[%s4213_s28 + $0xc0] sm:$0xff] %vm935_vm4, %v2308_v33  ;;  %v1942_v60 = vmax.f32 %v1814_v32, %v1911_v37  ;;  %v2197_v10 = vmax.f32 %v2069_v11, %v2166_v39  ;;  %v2119_v49 = vsel %vm694_vm3, %v2117_v58, %v2118_v35  ;;  %v2225_v62 = vmax.f32 %v4642_v55, %v4606_v53 }
 0x188   : > { %v2252_v4 = vmax.f32 %v2224_v29, %v4547_v63  ;;  %v1735_v3 = vsel %vm307_vm0, %v1733_v5, %v1734_v2  ;;  %v1863_v47 = vsel %vm436_vm1, %v1861_v40, %v1862_v20  ;;  %v2226_v7 = vmax.f32 %v2196_v21, %v4619_v57 }
 0x189   : > { %v2070_v0 = vmax.f32 %v1942_v60, %v1991_v28  ;;  %v2309_v8 = vmax.f32 %v2281_v25, %v2197_v10  ;;  %v1815_v50 = vmax.f32 %v4170_v14, %v1735_v3  ;;  %v2039_v15 = vsel %vm565_vm2, %v1990_v6, -inf }
 0x18a   : > { %v2282_v56 = vmax.f32 %v2252_v4, %v2196_v21  ;;  %v2253_v63 = vmax.f32 %v2225_v62, %v4570_v52  ;;  %v2227_v19 = vmax.f32 %v2197_v10, %v4642_v55  ;;  %v2254_v16 = vmax.f32 %v2226_v7, %v4583_v27 }
 0x18b   : > { %v2198_v24 = vmax.f32 %v2070_v0, %v2119_v49  ;;  %2337 = vst.msk [vmem:[%s4213_s28 + $0xc8] sm:$0xff] %vm935_vm4, %v2309_v8  ;;  %v1943_v44 = vmax.f32 %v1815_v50, %v1863_v47  ;;  %v2167_v14 = vsel %vm694_vm3, %v2118_v35, -inf }
 0x18c   : > { %v2283_v41 = vmax.f32 %v2253_v63, %v2197_v10  ;;  %v2255_v52 = vmax.f32 %v2227_v19, %v4606_v53 }
 0x18d   : > { %v2310_v51 = vmax.f32 %v2282_v56, %v2198_v24  ;;  %v2228_v22 = vmax.f32 %v2198_v24, %v2196_v21  ;;  %v2071_v9 = vmax.f32 %v1943_v44, %v2039_v15  ;;  %v2284_v18 = vmax.f32 %v2254_v16, %v2198_v24 }
 0x18f   : > { %2338 = vst.msk [vmem:[%s4213_s28 + $0xd0] sm:$0xff] %vm935_vm4, %v2310_v51  ;;  %v2256_v43 = vmax.f32 %v2228_v22, %v4619_v57  ;;  %v2199_v13 = vmax.f32 %v2071_v9, %v2167_v14  ;;  %2340 = vst.msk [vmem:[%s4213_s28 + $0xe0] sm:$0xff] %vm935_vm4, %v2284_v18 }
 0x191   : > { %2342 = vst.msk [vmem:[%s4213_s28 + $0xf0] sm:$0xff] %vm935_vm4, %v2256_v43  ;;  %v2311_v27 = vmax.f32 %v2283_v41, %v2199_v13  ;;  %v2285_v42 = vmax.f32 %v2255_v52, %v2199_v13  ;;  %v2229_v23 = vmax.f32 %v2199_v13, %v2197_v10 }
 0x193   : > { %2339 = vst.msk [vmem:[%s4213_s28 + $0xd8] sm:$0xff] %vm935_vm4, %v2311_v27  ;;  %2341 = vst.msk [vmem:[%s4213_s28 + $0xe8] sm:$0xff] %vm935_vm4, %v2285_v42  ;;  %v2257_v54 = vmax.f32 %v2229_v23, %v4642_v55 }
 0x195   : > { %2343 = vst.msk [vmem:[%s4213_s28 + $0xf8] sm:$0xff] %vm935_vm4, %v2257_v54 }
 0x196 PF: > { %s14_s14 = sadd.s32 1, %s2586_s14   ;;  %s4877_s12 = smov %s2582_s13 }
 0x197   : > { %p11_p5 = scmp.ge.s32.totalorder %s14_s14, 4   ;;  %s4878_s13 = smov %s4880_s15 }
 0x199   :  { %13 = sbr.rel (!%p11_p5) target bundleno = 2 (0x2), region = 78 }

</bundles_post_ra>
